<compile_context>
chip_gen: v5e
topology: v5e:2x2
jax: 0.10.0
libtpu: 0.0.40
codegen_flags: <defaults>
</compile_context>

<pallas_src>
import jax
import jax.numpy as jnp
from jax.experimental import pallas as pl
from jax.experimental.pallas import tpu as pltpu


# --------------------------------------------------------------------------
# shared math (reference only)

def _lstm_cell(x, h, c, w_ih, w_hh, b, H):
    """PyTorch-style LSTM cell; gate stacking order [i, f, g, o]."""
    gates = (jnp.dot(x, w_ih, preferred_element_type=jnp.float32)
             + jnp.dot(h, w_hh, preferred_element_type=jnp.float32)
             + b)
    i = jax.nn.sigmoid(gates[:, 0 * H:1 * H])
    f = jax.nn.sigmoid(gates[:, 1 * H:2 * H])
    g = jnp.tanh(gates[:, 2 * H:3 * H])
    o = jax.nn.sigmoid(gates[:, 3 * H:4 * H])
    c_new = f * c + i * g
    h_new = o * jnp.tanh(c_new)
    return h_new, c_new


def _mlp(x, w1, b1, w2, b2):
    h = jnp.maximum(jnp.dot(x, w1, preferred_element_type=jnp.float32) + b1, 0.0)
    return jnp.dot(h, w2, preferred_element_type=jnp.float32) + b2


# --------------------------------------------------------------------------
# Pallas kernel

def autoreg_lstm_lr_aux_kernel(ts_ref, lr_ref,
                               w_ts_ref, w_lr_ref, be_ref,
                               whh_ref, wd_ref, bd_ref,
                               w1f_ref, b1f_ref, w2f_ref, b2f_ref,
                               out_ref):
    # ts_ref : (B, T, ts_f)   native layout
    # lr_ref : (B, T, lr_f)
    # out_ref: (B, S, F)      F = ts_f + lr_f
    B, T, ts_f = ts_ref.shape
    H = whh_ref.shape[0]
    S = out_ref.shape[1]
    F = out_ref.shape[2]
    f32, bf16 = jnp.float32, jnp.bfloat16

    # hoisted loads (tiny arrays, read once)
    ts_all = ts_ref[...]                       # (B, T, ts_f)
    lr_all = lr_ref[...]                       # (B, T, lr_f)
    w_ts = w_ts_ref[...]                       # (ts_f, 4H) f32
    w_lr = w_lr_ref[...]                       # (lr_f, 4H) f32
    be = be_ref[...]                           # (1, 4H) f32 (b_ih + b_hh folded)
    whh = whh_ref[...]                         # (H, 4H) bf16
    wd = wd_ref[...]                           # (H, 4H) bf16
    bd = bd_ref[...]                           # (1, 4H) f32
    w1f = w1f_ref[...]                         # (H, 2H) bf16
    b1f = b1f_ref[...]                         # (1, 2H) f32
    w2f = w2f_ref[...]                         # (2H, F) bf16 (block-diagonal)
    b2f = b2f_ref[...]                         # (1, F)  f32

    # precomputed lane masks (hoisted out of all loops)
    lane4 = jax.lax.broadcasted_iota(jnp.int32, (B, 4 * H), 1)
    g_mask = (lane4 >= 2 * H) & (lane4 < 3 * H)          # tanh lanes of gates
    laneF = jax.lax.broadcasted_iota(jnp.int32, (B, F), 1)
    lr_mask = (laneF >= ts_f).astype(f32)                # lr lanes of the output

    # ---- encoder input projection, one tiny dot pair per step.  These are
    #      independent of the recurrence carry; with the loops fully unrolled
    #      the scheduler hoists them off the serial critical path.
    xw_steps = []
    for t in range(T):                          # T static & tiny -> full unroll
        x_ts = ts_all[:, t, :]                  # (B, ts_f)
        x_lr = lr_all[:, t, :]                  # (B, lr_f)
        xw_steps.append(jnp.dot(x_ts, w_ts, preferred_element_type=f32)
                        + jnp.dot(x_lr, w_lr, preferred_element_type=f32)
                        + be)                   # (B, 4H)

    # ---- encoder recurrence: ONE fused gate dot per serial step.
    h = jnp.zeros((B, H), f32)
    c = jnp.zeros((B, H), f32)
    for t in range(T):
        gates = xw_steps[t] + jnp.dot(h.astype(bf16), whh,
                                      preferred_element_type=f32)   # (B, 4H)
        # full-width activations + lane-mask select; gate chunks come out via
        # static lane slices (XLU slot).
        act = jnp.where(g_mask, jnp.tanh(gates), jax.nn.sigmoid(gates))
        i_g = act[:, 0 * H:1 * H]
        f_g = act[:, 1 * H:2 * H]
        g_g = act[:, 2 * H:3 * H]
        o_g = act[:, 3 * H:4 * H]
        c = f_g * c + i_g * g_g
        h = o_g * jnp.tanh(c)

    # ---- decoder enc chain (zero-state cell each step: c = i*g, h = o*tanh(i*g);
    #      w_hh_d and the forget gate vanish exactly).  ONE dot per step.
    enc = h
    encs = []
    for _ in range(S):                          # S static & tiny -> full unroll
        gates = jnp.dot(enc.astype(bf16), wd, preferred_element_type=f32) + bd
        act = jnp.where(g_mask, jnp.tanh(gates), jax.nn.sigmoid(gates))
        i_g = act[:, 0 * H:1 * H]
        g_g = act[:, 2 * H:3 * H]
        o_g = act[:, 3 * H:4 * H]
        enc = o_g * jnp.tanh(i_g * g_g)
        encs.append(enc)

    # ---- fused aux/delta MLP hoisted out of the decoder loop: run once over
    #      all S hidden states (better MXU row utilization, shorter serial chain).
    encs_all = jnp.concatenate(encs, axis=0)                         # (S*B, H)
    hid = jnp.maximum(jnp.dot(encs_all.astype(bf16), w1f,
                              preferred_element_type=f32) + b1f, 0.0)
    fused = jnp.dot(hid.astype(bf16), w2f,
                    preferred_element_type=f32) + b2f                # (S*B, F) = [aux | delta]

    # ---- lr carry (prefix sum over S) + direct (B, S, F) stores.
    lr_last = lr_all[:, T - 1, :]                                    # (B, lr_f)
    lr_acc = jnp.concatenate([jnp.zeros((B, ts_f), f32), lr_last], axis=1)  # [0 | lr_last]
    for s in range(S):
        step_out = fused[s * B:(s + 1) * B, :] + lr_acc   # [aux_s | delta_s + lr_{s-1}]
        lr_acc = step_out * lr_mask                       # carry [0 | lr_s]
        out_ref[:, s, :] = step_out


# --------------------------------------------------------------------------
# wrapper

def prepare_kernel_params(p):
    """Split / fuse / cast the module parameters into the kernel layout."""
    H = p["w_hh_e"].shape[0]
    ts_f = p["aw2"].shape[1]
    lr_f = p["dw2"].shape[1]
    f32, bf16 = jnp.float32, jnp.bfloat16

    w_ih_e = p["w_ih_e"].astype(f32)
    w_ts = w_ih_e[:ts_f]                       # (ts_f, 4H)
    w_lr = w_ih_e[ts_f:]                       # (lr_f, 4H)
    be = p["b_e"].astype(f32)                  # (1, 4H), b_ih + b_hh folded

    whh = p["w_hh_e"].astype(bf16)             # (H, 4H), gate order [i,f,g,o]
    wd = p["w_ih_d"].astype(bf16)              # (H, 4H); f-gate lanes unused
    bd = p["b_d"].astype(f32)                  # (1, 4H)

    # fused aux/delta MLP: layer1 concat on lanes, layer2 block-diagonal
    w1f = jnp.concatenate([p["aw1"], p["dw1"]], axis=1).astype(bf16)     # (H, 2H)
    b1f = jnp.concatenate([p["ab1"], p["db1"]], axis=1).astype(f32)      # (1, 2H)
    w2f = jnp.zeros((2 * H, ts_f + lr_f), f32)
    w2f = w2f.at[:H, :ts_f].set(p["aw2"]).at[H:, ts_f:].set(p["dw2"]).astype(bf16)
    b2f = jnp.concatenate([p["ab2"], p["db2"]], axis=1).astype(f32)      # (1, F)

    return [w_ts, w_lr, be, whh, wd, bd, w1f, b1f, w2f, b2f]


def autoreg_lstm_lr_aux(ts, lr, params, out_seq_len):
    """Forward pass; ts: (B, T, ts_f), lr: (B, T, lr_f) -> (B, S, ts_f+lr_f)."""
    B, T, ts_f = ts.shape
    lr_f = lr.shape[-1]
    F = ts_f + lr_f
    H = params["w_hh_e"].shape[0]
    S = out_seq_len

    # No wrapper-side layout ops: native (B, T, f) inputs, (B, S, F) output.
    args = [ts.astype(jnp.float32), lr.astype(jnp.float32)] + prepare_kernel_params(params)

    flops = (2 * T * B * (ts_f + lr_f) * 4 * H        # input projections
             + T * 2 * B * H * 4 * H                  # encoder recurrence (fused gates)
             + S * 2 * B * H * 4 * H                  # decoder gates (fused)
             + 2 * S * B * H * 2 * H                  # fused MLP layer 1
             + 2 * S * B * 2 * H * F)                 # fused MLP layer 2
    transcendentals = T * B * (8 * H + H) + S * B * (8 * H + H)
    bytes_accessed = (sum(int(a.size) * a.dtype.itemsize for a in args)
                      + B * S * F * 4)

    vmem_spec = pl.BlockSpec(memory_space=pltpu.MemorySpace.VMEM)
    out = pl.pallas_call(
        autoreg_lstm_lr_aux_kernel,
        out_shape=jax.ShapeDtypeStruct((B, S, F), jnp.float32),
        in_specs=[vmem_spec] * len(args),
        out_specs=vmem_spec,
        cost_estimate=pl.CostEstimate(flops=flops,
                                      transcendentals=transcendentals,
                                      bytes_accessed=bytes_accessed),
    )(*args)
    return out                                          # already (B, S, F)


# --------------------------------------------------------------------------
# parameter construction (PyTorch-equivalent layout, weights pre-transposed)

def init_params(key, ts_f, lr_f, hidden):
    din = ts_f + lr_f
    H = hidden
    ks = jax.random.split(key, 14)

    def u(k, shape, fan_in):
        bound = 1.0 / jnp.sqrt(jnp.float32(fan_in))
        return jax.random.uniform(k, shape, jnp.float32, -bound, bound)

    return {
        # encoder LSTM (weights stored already transposed: (in, 4H))
        "w_ih_e": u(ks[0], (din, 4 * H), H),
        "w_hh_e": u(ks[1], (H, 4 * H), H),
        "b_e":    u(ks[2], (1, 4 * H), H),      # b_ih + b_hh folded together
        # decoder LSTM (w_hh_d only used by the reference; kernel drops it)
        "w_ih_d": u(ks[3], (H, 4 * H), H),
        "w_hh_d": u(ks[4], (H, 4 * H), H),
        "b_d":    u(ks[5], (1, 4 * H), H),
        # to_aux MLP:  H -> H -> ts_f
        "aw1": u(ks[6], (H, H), H),
        "ab1": u(ks[7], (1, H), H),
        "aw2": u(ks[8], (H, ts_f), H),
        "ab2": u(ks[9], (1, ts_f), H),
        # to_delta MLP: H -> H -> lr_f
        "dw1": u(ks[10], (H, H), H),
        "db1": u(ks[11], (1, H), H),
        "dw2": u(ks[12], (H, lr_f), H),
        "db2": u(ks[13], (1, lr_f), H),
    }


# --------------------------------------------------------------------------
# pure-JAX reference (full f32, faithful to the PyTorch module)

def reference_forward(ts, lr, p, S):
    x = jnp.concatenate([ts, lr], axis=2)
    B, T, _ = x.shape
    H = p["w_hh_e"].shape[0]
    h = jnp.zeros((B, H), jnp.float32)
    c = jnp.zeros((B, H), jnp.float32)
    for t in range(T):
        h, c = _lstm_cell(x[:, t, :], h, c, p["w_ih_e"], p["w_hh_e"], p["b_e"], H)
    enc = h
    lr_cur = lr[:, -1, :]
    zeros_h = jnp.zeros((B, H), jnp.float32)
    outs = []
    for _ in range(S):
        hd, _ = _lstm_cell(enc, zeros_h, zeros_h, p["w_ih_d"], p["w_hh_d"], p["b_d"], H)
        enc = hd
        aux = _mlp(enc, p["aw1"], p["ab1"], p["aw2"], p["ab2"])
        delta = _mlp(enc, p["dw1"], p["db1"], p["dw2"], p["db2"])
        lr_cur = delta + lr_cur
        outs.append(jnp.concatenate([aux, lr_cur], axis=-1)[:, None, :])
    return jnp.concatenate(outs, axis=1)


# --------------------------------------------------------------------------

if __name__ == "__main__":
    B, T = 2, 8
    TS_F, LR_F, HIDDEN, OUT_SEQ = 4, 4, 32, 3

    key = jax.random.PRNGKey(0)
    k_ts, k_lr, k_par = jax.random.split(key, 3)
    ts = jax.random.normal(k_ts, (B, T, TS_F), jnp.float32)
    lr = jax.random.normal(k_lr, (B, T, LR_F), jnp.float32)
    params = init_params(k_par, TS_F, LR_F, HIDDEN)

    out = autoreg_lstm_lr_aux(ts, lr, params, OUT_SEQ)
    out = jax.block_until_ready(out)

    assert out.shape == (B, OUT_SEQ, TS_F + LR_F), out.shape
    ref = reference_forward(ts, lr, params, OUT_SEQ)
    # Kernel uses bf16 weights on the recurrent/decoder/MLP matmuls (f32
    # accumulation); tolerance relaxed vs. the pure-f32 reference accordingly.
    assert jnp.allclose(out, ref, atol=2e-2, rtol=2e-2), \
        float(jnp.max(jnp.abs(out - ref)))

    print("KERNEL_OK")
</pallas_src>

<mosaic_0001>
module attributes {stable_mosaic.version = 11 : i64} {
  func.func @autoreg_lstm_lr_aux_kernel(%arg0: memref<2x8x4xf32, #tpu.memory_space<vmem>>, %arg1: memref<2x8x4xf32, #tpu.memory_space<vmem>>, %arg2: memref<4x128xf32, #tpu.memory_space<vmem>>, %arg3: memref<4x128xf32, #tpu.memory_space<vmem>>, %arg4: memref<1x128xf32, #tpu.memory_space<vmem>>, %arg5: memref<32x128xbf16, #tpu.memory_space<vmem>>, %arg6: memref<32x128xbf16, #tpu.memory_space<vmem>>, %arg7: memref<1x128xf32, #tpu.memory_space<vmem>>, %arg8: memref<32x64xbf16, #tpu.memory_space<vmem>>, %arg9: memref<1x64xf32, #tpu.memory_space<vmem>>, %arg10: memref<64x8xbf16, #tpu.memory_space<vmem>>, %arg11: memref<1x8xf32, #tpu.memory_space<vmem>>, %arg12: memref<2x3x8xf32, #tpu.memory_space<vmem>>) attributes {dimension_semantics = [], scalar_prefetch = 0 : i64, scratch_operands = 0 : i64, tpu.core_type = #tpu.core_type<tc>} {
    %c0 = arith.constant 0 : index
    %c0_0 = arith.constant 0 : index
    %c0_1 = arith.constant 0 : index
    %0 = vector.load %arg0[%c0, %c0_0, %c0_1] : memref<2x8x4xf32, #tpu.memory_space<vmem>>, vector<2x8x4xf32>
    %c0_2 = arith.constant 0 : index
    %c0_3 = arith.constant 0 : index
    %c0_4 = arith.constant 0 : index
    %1 = vector.load %arg1[%c0_2, %c0_3, %c0_4] : memref<2x8x4xf32, #tpu.memory_space<vmem>>, vector<2x8x4xf32>
    %c0_5 = arith.constant 0 : index
    %c0_6 = arith.constant 0 : index
    %2 = vector.load %arg2[%c0_5, %c0_6] : memref<4x128xf32, #tpu.memory_space<vmem>>, vector<4x128xf32>
    %c0_7 = arith.constant 0 : index
    %c0_8 = arith.constant 0 : index
    %3 = vector.load %arg3[%c0_7, %c0_8] : memref<4x128xf32, #tpu.memory_space<vmem>>, vector<4x128xf32>
    %c0_9 = arith.constant 0 : index
    %c0_10 = arith.constant 0 : index
    %4 = vector.load %arg4[%c0_9, %c0_10] : memref<1x128xf32, #tpu.memory_space<vmem>>, vector<1x128xf32>
    %c0_11 = arith.constant 0 : index
    %c0_12 = arith.constant 0 : index
    %5 = vector.load %arg5[%c0_11, %c0_12] : memref<32x128xbf16, #tpu.memory_space<vmem>>, vector<32x128xbf16>
    %c0_13 = arith.constant 0 : index
    %c0_14 = arith.constant 0 : index
    %6 = vector.load %arg6[%c0_13, %c0_14] : memref<32x128xbf16, #tpu.memory_space<vmem>>, vector<32x128xbf16>
    %c0_15 = arith.constant 0 : index
    %c0_16 = arith.constant 0 : index
    %7 = vector.load %arg7[%c0_15, %c0_16] : memref<1x128xf32, #tpu.memory_space<vmem>>, vector<1x128xf32>
    %c0_17 = arith.constant 0 : index
    %c0_18 = arith.constant 0 : index
    %8 = vector.load %arg8[%c0_17, %c0_18] : memref<32x64xbf16, #tpu.memory_space<vmem>>, vector<32x64xbf16>
    %c0_19 = arith.constant 0 : index
    %c0_20 = arith.constant 0 : index
    %9 = vector.load %arg9[%c0_19, %c0_20] : memref<1x64xf32, #tpu.memory_space<vmem>>, vector<1x64xf32>
    %c0_21 = arith.constant 0 : index
    %c0_22 = arith.constant 0 : index
    %10 = vector.load %arg10[%c0_21, %c0_22] : memref<64x8xbf16, #tpu.memory_space<vmem>>, vector<64x8xbf16>
    %c0_23 = arith.constant 0 : index
    %c0_24 = arith.constant 0 : index
    %11 = vector.load %arg11[%c0_23, %c0_24] : memref<1x8xf32, #tpu.memory_space<vmem>>, vector<1x8xf32>
    %12 = tpu.iota {dimensions = array<i32: 1>} : vector<2x128xi32>
    %c64_i32 = arith.constant 64 : i32
    %13 = vector.broadcast %c64_i32 : i32 to vector<2x128xi32>
    %14 = arith.cmpi sge, %12, %13 : vector<2x128xi32>
    %c96_i32 = arith.constant 96 : i32
    %15 = vector.broadcast %c96_i32 : i32 to vector<2x128xi32>
    %16 = arith.cmpi slt, %12, %15 : vector<2x128xi32>
    %17 = arith.andi %14, %16 : vector<2x128xi1>
    %18 = tpu.iota {dimensions = array<i32: 1>} : vector<2x8xi32>
    %c4_i32 = arith.constant 4 : i32
    %19 = vector.broadcast %c4_i32 : i32 to vector<2x8xi32>
    %20 = arith.cmpi sge, %18, %19 : vector<2x8xi32>
    %21 = arith.extui %20 : vector<2x8xi1> to vector<2x8xi32>
    %22 = arith.sitofp %21 : vector<2x8xi32> to vector<2x8xf32>
    %23 = vector.extract_strided_slice %0 {offsets = [0, 0, 0], sizes = [2, 1, 4], strides = [1, 1, 1]} : vector<2x8x4xf32> to vector<2x1x4xf32>
    %24 = vector.shape_cast %23 : vector<2x1x4xf32> to vector<2x4xf32>
    %25 = vector.extract_strided_slice %1 {offsets = [0, 0, 0], sizes = [2, 1, 4], strides = [1, 1, 1]} : vector<2x8x4xf32> to vector<2x1x4xf32>
    %26 = vector.shape_cast %25 : vector<2x1x4xf32> to vector<2x4xf32>
    %cst = arith.constant dense<0.000000e+00> : vector<2x128xf32>
    %27 = tpu.matmul %24, %2, %cst {dimension_numbers = #tpu.dot_dimension_numbers<[1], [0], [0], [1], [0, 0, 1, 1], [], []>} : vector<2x4xf32>, vector<4x128xf32>, vector<2x128xf32> -> vector<2x128xf32>
    %cst_25 = arith.constant dense<0.000000e+00> : vector<2x128xf32>
    %28 = tpu.matmul %26, %3, %cst_25 {dimension_numbers = #tpu.dot_dimension_numbers<[1], [0], [0], [1], [0, 0, 1, 1], [], []>} : vector<2x4xf32>, vector<4x128xf32>, vector<2x128xf32> -> vector<2x128xf32>
    %29 = arith.addf %27, %28 : vector<2x128xf32>
    %30 = vector.broadcast %4 : vector<1x128xf32> to vector<2x128xf32>
    %31 = arith.addf %29, %30 : vector<2x128xf32>
    %32 = vector.extract_strided_slice %0 {offsets = [0, 1, 0], sizes = [2, 1, 4], strides = [1, 1, 1]} : vector<2x8x4xf32> to vector<2x1x4xf32>
    %33 = vector.shape_cast %32 : vector<2x1x4xf32> to vector<2x4xf32>
    %34 = vector.extract_strided_slice %1 {offsets = [0, 1, 0], sizes = [2, 1, 4], strides = [1, 1, 1]} : vector<2x8x4xf32> to vector<2x1x4xf32>
    %35 = vector.shape_cast %34 : vector<2x1x4xf32> to vector<2x4xf32>
    %cst_26 = arith.constant dense<0.000000e+00> : vector<2x128xf32>
    %36 = tpu.matmul %33, %2, %cst_26 {dimension_numbers = #tpu.dot_dimension_numbers<[1], [0], [0], [1], [0, 0, 1, 1], [], []>} : vector<2x4xf32>, vector<4x128xf32>, vector<2x128xf32> -> vector<2x128xf32>
    %cst_27 = arith.constant dense<0.000000e+00> : vector<2x128xf32>
    %37 = tpu.matmul %35, %3, %cst_27 {dimension_numbers = #tpu.dot_dimension_numbers<[1], [0], [0], [1], [0, 0, 1, 1], [], []>} : vector<2x4xf32>, vector<4x128xf32>, vector<2x128xf32> -> vector<2x128xf32>
    %38 = arith.addf %36, %37 : vector<2x128xf32>
    %39 = vector.broadcast %4 : vector<1x128xf32> to vector<2x128xf32>
    %40 = arith.addf %38, %39 : vector<2x128xf32>
    %41 = vector.extract_strided_slice %0 {offsets = [0, 2, 0], sizes = [2, 1, 4], strides = [1, 1, 1]} : vector<2x8x4xf32> to vector<2x1x4xf32>
    %42 = vector.shape_cast %41 : vector<2x1x4xf32> to vector<2x4xf32>
    %43 = vector.extract_strided_slice %1 {offsets = [0, 2, 0], sizes = [2, 1, 4], strides = [1, 1, 1]} : vector<2x8x4xf32> to vector<2x1x4xf32>
    %44 = vector.shape_cast %43 : vector<2x1x4xf32> to vector<2x4xf32>
    %cst_28 = arith.constant dense<0.000000e+00> : vector<2x128xf32>
    %45 = tpu.matmul %42, %2, %cst_28 {dimension_numbers = #tpu.dot_dimension_numbers<[1], [0], [0], [1], [0, 0, 1, 1], [], []>} : vector<2x4xf32>, vector<4x128xf32>, vector<2x128xf32> -> vector<2x128xf32>
    %cst_29 = arith.constant dense<0.000000e+00> : vector<2x128xf32>
    %46 = tpu.matmul %44, %3, %cst_29 {dimension_numbers = #tpu.dot_dimension_numbers<[1], [0], [0], [1], [0, 0, 1, 1], [], []>} : vector<2x4xf32>, vector<4x128xf32>, vector<2x128xf32> -> vector<2x128xf32>
    %47 = arith.addf %45, %46 : vector<2x128xf32>
    %48 = vector.broadcast %4 : vector<1x128xf32> to vector<2x128xf32>
    %49 = arith.addf %47, %48 : vector<2x128xf32>
    %50 = vector.extract_strided_slice %0 {offsets = [0, 3, 0], sizes = [2, 1, 4], strides = [1, 1, 1]} : vector<2x8x4xf32> to vector<2x1x4xf32>
    %51 = vector.shape_cast %50 : vector<2x1x4xf32> to vector<2x4xf32>
    %52 = vector.extract_strided_slice %1 {offsets = [0, 3, 0], sizes = [2, 1, 4], strides = [1, 1, 1]} : vector<2x8x4xf32> to vector<2x1x4xf32>
    %53 = vector.shape_cast %52 : vector<2x1x4xf32> to vector<2x4xf32>
    %cst_30 = arith.constant dense<0.000000e+00> : vector<2x128xf32>
    %54 = tpu.matmul %51, %2, %cst_30 {dimension_numbers = #tpu.dot_dimension_numbers<[1], [0], [0], [1], [0, 0, 1, 1], [], []>} : vector<2x4xf32>, vector<4x128xf32>, vector<2x128xf32> -> vector<2x128xf32>
    %cst_31 = arith.constant dense<0.000000e+00> : vector<2x128xf32>
    %55 = tpu.matmul %53, %3, %cst_31 {dimension_numbers = #tpu.dot_dimension_numbers<[1], [0], [0], [1], [0, 0, 1, 1], [], []>} : vector<2x4xf32>, vector<4x128xf32>, vector<2x128xf32> -> vector<2x128xf32>
    %56 = arith.addf %54, %55 : vector<2x128xf32>
    %57 = vector.broadcast %4 : vector<1x128xf32> to vector<2x128xf32>
    %58 = arith.addf %56, %57 : vector<2x128xf32>
    %59 = vector.extract_strided_slice %0 {offsets = [0, 4, 0], sizes = [2, 1, 4], strides = [1, 1, 1]} : vector<2x8x4xf32> to vector<2x1x4xf32>
    %60 = vector.shape_cast %59 : vector<2x1x4xf32> to vector<2x4xf32>
    %61 = vector.extract_strided_slice %1 {offsets = [0, 4, 0], sizes = [2, 1, 4], strides = [1, 1, 1]} : vector<2x8x4xf32> to vector<2x1x4xf32>
    %62 = vector.shape_cast %61 : vector<2x1x4xf32> to vector<2x4xf32>
    %cst_32 = arith.constant dense<0.000000e+00> : vector<2x128xf32>
    %63 = tpu.matmul %60, %2, %cst_32 {dimension_numbers = #tpu.dot_dimension_numbers<[1], [0], [0], [1], [0, 0, 1, 1], [], []>} : vector<2x4xf32>, vector<4x128xf32>, vector<2x128xf32> -> vector<2x128xf32>
    %cst_33 = arith.constant dense<0.000000e+00> : vector<2x128xf32>
    %64 = tpu.matmul %62, %3, %cst_33 {dimension_numbers = #tpu.dot_dimension_numbers<[1], [0], [0], [1], [0, 0, 1, 1], [], []>} : vector<2x4xf32>, vector<4x128xf32>, vector<2x128xf32> -> vector<2x128xf32>
    %65 = arith.addf %63, %64 : vector<2x128xf32>
    %66 = vector.broadcast %4 : vector<1x128xf32> to vector<2x128xf32>
    %67 = arith.addf %65, %66 : vector<2x128xf32>
    %68 = vector.extract_strided_slice %0 {offsets = [0, 5, 0], sizes = [2, 1, 4], strides = [1, 1, 1]} : vector<2x8x4xf32> to vector<2x1x4xf32>
    %69 = vector.shape_cast %68 : vector<2x1x4xf32> to vector<2x4xf32>
    %70 = vector.extract_strided_slice %1 {offsets = [0, 5, 0], sizes = [2, 1, 4], strides = [1, 1, 1]} : vector<2x8x4xf32> to vector<2x1x4xf32>
    %71 = vector.shape_cast %70 : vector<2x1x4xf32> to vector<2x4xf32>
    %cst_34 = arith.constant dense<0.000000e+00> : vector<2x128xf32>
    %72 = tpu.matmul %69, %2, %cst_34 {dimension_numbers = #tpu.dot_dimension_numbers<[1], [0], [0], [1], [0, 0, 1, 1], [], []>} : vector<2x4xf32>, vector<4x128xf32>, vector<2x128xf32> -> vector<2x128xf32>
    %cst_35 = arith.constant dense<0.000000e+00> : vector<2x128xf32>
    %73 = tpu.matmul %71, %3, %cst_35 {dimension_numbers = #tpu.dot_dimension_numbers<[1], [0], [0], [1], [0, 0, 1, 1], [], []>} : vector<2x4xf32>, vector<4x128xf32>, vector<2x128xf32> -> vector<2x128xf32>
    %74 = arith.addf %72, %73 : vector<2x128xf32>
    %75 = vector.broadcast %4 : vector<1x128xf32> to vector<2x128xf32>
    %76 = arith.addf %74, %75 : vector<2x128xf32>
    %77 = vector.extract_strided_slice %0 {offsets = [0, 6, 0], sizes = [2, 1, 4], strides = [1, 1, 1]} : vector<2x8x4xf32> to vector<2x1x4xf32>
    %78 = vector.shape_cast %77 : vector<2x1x4xf32> to vector<2x4xf32>
    %79 = vector.extract_strided_slice %1 {offsets = [0, 6, 0], sizes = [2, 1, 4], strides = [1, 1, 1]} : vector<2x8x4xf32> to vector<2x1x4xf32>
    %80 = vector.shape_cast %79 : vector<2x1x4xf32> to vector<2x4xf32>
    %cst_36 = arith.constant dense<0.000000e+00> : vector<2x128xf32>
    %81 = tpu.matmul %78, %2, %cst_36 {dimension_numbers = #tpu.dot_dimension_numbers<[1], [0], [0], [1], [0, 0, 1, 1], [], []>} : vector<2x4xf32>, vector<4x128xf32>, vector<2x128xf32> -> vector<2x128xf32>
    %cst_37 = arith.constant dense<0.000000e+00> : vector<2x128xf32>
    %82 = tpu.matmul %80, %3, %cst_37 {dimension_numbers = #tpu.dot_dimension_numbers<[1], [0], [0], [1], [0, 0, 1, 1], [], []>} : vector<2x4xf32>, vector<4x128xf32>, vector<2x128xf32> -> vector<2x128xf32>
    %83 = arith.addf %81, %82 : vector<2x128xf32>
    %84 = vector.broadcast %4 : vector<1x128xf32> to vector<2x128xf32>
    %85 = arith.addf %83, %84 : vector<2x128xf32>
    %86 = vector.extract_strided_slice %0 {offsets = [0, 7, 0], sizes = [2, 1, 4], strides = [1, 1, 1]} : vector<2x8x4xf32> to vector<2x1x4xf32>
    %87 = vector.shape_cast %86 : vector<2x1x4xf32> to vector<2x4xf32>
    %88 = vector.extract_strided_slice %1 {offsets = [0, 7, 0], sizes = [2, 1, 4], strides = [1, 1, 1]} : vector<2x8x4xf32> to vector<2x1x4xf32>
    %89 = vector.shape_cast %88 : vector<2x1x4xf32> to vector<2x4xf32>
    %cst_38 = arith.constant dense<0.000000e+00> : vector<2x128xf32>
    %90 = tpu.matmul %87, %2, %cst_38 {dimension_numbers = #tpu.dot_dimension_numbers<[1], [0], [0], [1], [0, 0, 1, 1], [], []>} : vector<2x4xf32>, vector<4x128xf32>, vector<2x128xf32> -> vector<2x128xf32>
    %cst_39 = arith.constant dense<0.000000e+00> : vector<2x128xf32>
    %91 = tpu.matmul %89, %3, %cst_39 {dimension_numbers = #tpu.dot_dimension_numbers<[1], [0], [0], [1], [0, 0, 1, 1], [], []>} : vector<2x4xf32>, vector<4x128xf32>, vector<2x128xf32> -> vector<2x128xf32>
    %92 = arith.addf %90, %91 : vector<2x128xf32>
    %93 = vector.broadcast %4 : vector<1x128xf32> to vector<2x128xf32>
    %94 = arith.addf %92, %93 : vector<2x128xf32>
    %cst_40 = arith.constant 0.000000e+00 : f32
    %95 = vector.broadcast %cst_40 : f32 to vector<2x32xf32>
    %cst_41 = arith.constant 0.000000e+00 : f32
    %96 = vector.broadcast %cst_41 : f32 to vector<2x32xf32>
    %97 = arith.truncf %95 : vector<2x32xf32> to vector<2x32xbf16>
    %cst_42 = arith.constant dense<0.000000e+00> : vector<2x128xf32>
    %98 = tpu.matmul %97, %5, %cst_42 {dimension_numbers = #tpu.dot_dimension_numbers<[1], [0], [0], [1], [0, 0, 1, 1], [], []>} : vector<2x32xbf16>, vector<32x128xbf16>, vector<2x128xf32> -> vector<2x128xf32>
    %99 = arith.addf %31, %98 : vector<2x128xf32>
    %100 = math.tanh %99 : vector<2x128xf32>
    %101 = arith.negf %99 : vector<2x128xf32>
    %102 = math.exp %101 : vector<2x128xf32>
    %cst_43 = arith.constant 1.000000e+00 : f32
    %103 = vector.broadcast %cst_43 : f32 to vector<2x128xf32>
    %104 = arith.addf %103, %102 : vector<2x128xf32>
    %105 = arith.divf %103, %104 : vector<2x128xf32>
    %106 = arith.select %17, %100, %105 : vector<2x128xi1>, vector<2x128xf32>
    %107 = vector.extract_strided_slice %106 {offsets = [0, 0], sizes = [2, 32], strides = [1, 1]} : vector<2x128xf32> to vector<2x32xf32>
    %108 = vector.extract_strided_slice %106 {offsets = [0, 32], sizes = [2, 32], strides = [1, 1]} : vector<2x128xf32> to vector<2x32xf32>
    %109 = vector.extract_strided_slice %106 {offsets = [0, 64], sizes = [2, 32], strides = [1, 1]} : vector<2x128xf32> to vector<2x32xf32>
    %110 = vector.extract_strided_slice %106 {offsets = [0, 96], sizes = [2, 32], strides = [1, 1]} : vector<2x128xf32> to vector<2x32xf32>
    %111 = arith.mulf %108, %96 : vector<2x32xf32>
    %112 = arith.mulf %107, %109 : vector<2x32xf32>
    %113 = arith.addf %111, %112 : vector<2x32xf32>
    %114 = math.tanh %113 : vector<2x32xf32>
    %115 = arith.mulf %110, %114 : vector<2x32xf32>
    %116 = arith.truncf %115 : vector<2x32xf32> to vector<2x32xbf16>
    %cst_44 = arith.constant dense<0.000000e+00> : vector<2x128xf32>
    %117 = tpu.matmul %116, %5, %cst_44 {dimension_numbers = #tpu.dot_dimension_numbers<[1], [0], [0], [1], [0, 0, 1, 1], [], []>} : vector<2x32xbf16>, vector<32x128xbf16>, vector<2x128xf32> -> vector<2x128xf32>
    %118 = arith.addf %40, %117 : vector<2x128xf32>
    %119 = math.tanh %118 : vector<2x128xf32>
    %120 = arith.negf %118 : vector<2x128xf32>
    %121 = math.exp %120 : vector<2x128xf32>
    %cst_45 = arith.constant 1.000000e+00 : f32
    %122 = vector.broadcast %cst_45 : f32 to vector<2x128xf32>
    %123 = arith.addf %122, %121 : vector<2x128xf32>
    %124 = arith.divf %122, %123 : vector<2x128xf32>
    %125 = arith.select %17, %119, %124 : vector<2x128xi1>, vector<2x128xf32>
    %126 = vector.extract_strided_slice %125 {offsets = [0, 0], sizes = [2, 32], strides = [1, 1]} : vector<2x128xf32> to vector<2x32xf32>
    %127 = vector.extract_strided_slice %125 {offsets = [0, 32], sizes = [2, 32], strides = [1, 1]} : vector<2x128xf32> to vector<2x32xf32>
    %128 = vector.extract_strided_slice %125 {offsets = [0, 64], sizes = [2, 32], strides = [1, 1]} : vector<2x128xf32> to vector<2x32xf32>
    %129 = vector.extract_strided_slice %125 {offsets = [0, 96], sizes = [2, 32], strides = [1, 1]} : vector<2x128xf32> to vector<2x32xf32>
    %130 = arith.mulf %127, %113 : vector<2x32xf32>
    %131 = arith.mulf %126, %128 : vector<2x32xf32>
    %132 = arith.addf %130, %131 : vector<2x32xf32>
    %133 = math.tanh %132 : vector<2x32xf32>
    %134 = arith.mulf %129, %133 : vector<2x32xf32>
    %135 = arith.truncf %134 : vector<2x32xf32> to vector<2x32xbf16>
    %cst_46 = arith.constant dense<0.000000e+00> : vector<2x128xf32>
    %136 = tpu.matmul %135, %5, %cst_46 {dimension_numbers = #tpu.dot_dimension_numbers<[1], [0], [0], [1], [0, 0, 1, 1], [], []>} : vector<2x32xbf16>, vector<32x128xbf16>, vector<2x128xf32> -> vector<2x128xf32>
    %137 = arith.addf %49, %136 : vector<2x128xf32>
    %138 = math.tanh %137 : vector<2x128xf32>
    %139 = arith.negf %137 : vector<2x128xf32>
    %140 = math.exp %139 : vector<2x128xf32>
    %cst_47 = arith.constant 1.000000e+00 : f32
    %141 = vector.broadcast %cst_47 : f32 to vector<2x128xf32>
    %142 = arith.addf %141, %140 : vector<2x128xf32>
    %143 = arith.divf %141, %142 : vector<2x128xf32>
    %144 = arith.select %17, %138, %143 : vector<2x128xi1>, vector<2x128xf32>
    %145 = vector.extract_strided_slice %144 {offsets = [0, 0], sizes = [2, 32], strides = [1, 1]} : vector<2x128xf32> to vector<2x32xf32>
    %146 = vector.extract_strided_slice %144 {offsets = [0, 32], sizes = [2, 32], strides = [1, 1]} : vector<2x128xf32> to vector<2x32xf32>
    %147 = vector.extract_strided_slice %144 {offsets = [0, 64], sizes = [2, 32], strides = [1, 1]} : vector<2x128xf32> to vector<2x32xf32>
    %148 = vector.extract_strided_slice %144 {offsets = [0, 96], sizes = [2, 32], strides = [1, 1]} : vector<2x128xf32> to vector<2x32xf32>
    %149 = arith.mulf %146, %132 : vector<2x32xf32>
    %150 = arith.mulf %145, %147 : vector<2x32xf32>
    %151 = arith.addf %149, %150 : vector<2x32xf32>
    %152 = math.tanh %151 : vector<2x32xf32>
    %153 = arith.mulf %148, %152 : vector<2x32xf32>
    %154 = arith.truncf %153 : vector<2x32xf32> to vector<2x32xbf16>
    %cst_48 = arith.constant dense<0.000000e+00> : vector<2x128xf32>
    %155 = tpu.matmul %154, %5, %cst_48 {dimension_numbers = #tpu.dot_dimension_numbers<[1], [0], [0], [1], [0, 0, 1, 1], [], []>} : vector<2x32xbf16>, vector<32x128xbf16>, vector<2x128xf32> -> vector<2x128xf32>
    %156 = arith.addf %58, %155 : vector<2x128xf32>
    %157 = math.tanh %156 : vector<2x128xf32>
    %158 = arith.negf %156 : vector<2x128xf32>
    %159 = math.exp %158 : vector<2x128xf32>
    %cst_49 = arith.constant 1.000000e+00 : f32
    %160 = vector.broadcast %cst_49 : f32 to vector<2x128xf32>
    %161 = arith.addf %160, %159 : vector<2x128xf32>
    %162 = arith.divf %160, %161 : vector<2x128xf32>
    %163 = arith.select %17, %157, %162 : vector<2x128xi1>, vector<2x128xf32>
    %164 = vector.extract_strided_slice %163 {offsets = [0, 0], sizes = [2, 32], strides = [1, 1]} : vector<2x128xf32> to vector<2x32xf32>
    %165 = vector.extract_strided_slice %163 {offsets = [0, 32], sizes = [2, 32], strides = [1, 1]} : vector<2x128xf32> to vector<2x32xf32>
    %166 = vector.extract_strided_slice %163 {offsets = [0, 64], sizes = [2, 32], strides = [1, 1]} : vector<2x128xf32> to vector<2x32xf32>
    %167 = vector.extract_strided_slice %163 {offsets = [0, 96], sizes = [2, 32], strides = [1, 1]} : vector<2x128xf32> to vector<2x32xf32>
    %168 = arith.mulf %165, %151 : vector<2x32xf32>
    %169 = arith.mulf %164, %166 : vector<2x32xf32>
    %170 = arith.addf %168, %169 : vector<2x32xf32>
    %171 = math.tanh %170 : vector<2x32xf32>
    %172 = arith.mulf %167, %171 : vector<2x32xf32>
    %173 = arith.truncf %172 : vector<2x32xf32> to vector<2x32xbf16>
    %cst_50 = arith.constant dense<0.000000e+00> : vector<2x128xf32>
    %174 = tpu.matmul %173, %5, %cst_50 {dimension_numbers = #tpu.dot_dimension_numbers<[1], [0], [0], [1], [0, 0, 1, 1], [], []>} : vector<2x32xbf16>, vector<32x128xbf16>, vector<2x128xf32> -> vector<2x128xf32>
    %175 = arith.addf %67, %174 : vector<2x128xf32>
    %176 = math.tanh %175 : vector<2x128xf32>
    %177 = arith.negf %175 : vector<2x128xf32>
    %178 = math.exp %177 : vector<2x128xf32>
    %cst_51 = arith.constant 1.000000e+00 : f32
    %179 = vector.broadcast %cst_51 : f32 to vector<2x128xf32>
    %180 = arith.addf %179, %178 : vector<2x128xf32>
    %181 = arith.divf %179, %180 : vector<2x128xf32>
    %182 = arith.select %17, %176, %181 : vector<2x128xi1>, vector<2x128xf32>
    %183 = vector.extract_strided_slice %182 {offsets = [0, 0], sizes = [2, 32], strides = [1, 1]} : vector<2x128xf32> to vector<2x32xf32>
    %184 = vector.extract_strided_slice %182 {offsets = [0, 32], sizes = [2, 32], strides = [1, 1]} : vector<2x128xf32> to vector<2x32xf32>
    %185 = vector.extract_strided_slice %182 {offsets = [0, 64], sizes = [2, 32], strides = [1, 1]} : vector<2x128xf32> to vector<2x32xf32>
    %186 = vector.extract_strided_slice %182 {offsets = [0, 96], sizes = [2, 32], strides = [1, 1]} : vector<2x128xf32> to vector<2x32xf32>
    %187 = arith.mulf %184, %170 : vector<2x32xf32>
    %188 = arith.mulf %183, %185 : vector<2x32xf32>
    %189 = arith.addf %187, %188 : vector<2x32xf32>
    %190 = math.tanh %189 : vector<2x32xf32>
    %191 = arith.mulf %186, %190 : vector<2x32xf32>
    %192 = arith.truncf %191 : vector<2x32xf32> to vector<2x32xbf16>
    %cst_52 = arith.constant dense<0.000000e+00> : vector<2x128xf32>
    %193 = tpu.matmul %192, %5, %cst_52 {dimension_numbers = #tpu.dot_dimension_numbers<[1], [0], [0], [1], [0, 0, 1, 1], [], []>} : vector<2x32xbf16>, vector<32x128xbf16>, vector<2x128xf32> -> vector<2x128xf32>
    %194 = arith.addf %76, %193 : vector<2x128xf32>
    %195 = math.tanh %194 : vector<2x128xf32>
    %196 = arith.negf %194 : vector<2x128xf32>
    %197 = math.exp %196 : vector<2x128xf32>
    %cst_53 = arith.constant 1.000000e+00 : f32
    %198 = vector.broadcast %cst_53 : f32 to vector<2x128xf32>
    %199 = arith.addf %198, %197 : vector<2x128xf32>
    %200 = arith.divf %198, %199 : vector<2x128xf32>
    %201 = arith.select %17, %195, %200 : vector<2x128xi1>, vector<2x128xf32>
    %202 = vector.extract_strided_slice %201 {offsets = [0, 0], sizes = [2, 32], strides = [1, 1]} : vector<2x128xf32> to vector<2x32xf32>
    %203 = vector.extract_strided_slice %201 {offsets = [0, 32], sizes = [2, 32], strides = [1, 1]} : vector<2x128xf32> to vector<2x32xf32>
    %204 = vector.extract_strided_slice %201 {offsets = [0, 64], sizes = [2, 32], strides = [1, 1]} : vector<2x128xf32> to vector<2x32xf32>
    %205 = vector.extract_strided_slice %201 {offsets = [0, 96], sizes = [2, 32], strides = [1, 1]} : vector<2x128xf32> to vector<2x32xf32>
    %206 = arith.mulf %203, %189 : vector<2x32xf32>
    %207 = arith.mulf %202, %204 : vector<2x32xf32>
    %208 = arith.addf %206, %207 : vector<2x32xf32>
    %209 = math.tanh %208 : vector<2x32xf32>
    %210 = arith.mulf %205, %209 : vector<2x32xf32>
    %211 = arith.truncf %210 : vector<2x32xf32> to vector<2x32xbf16>
    %cst_54 = arith.constant dense<0.000000e+00> : vector<2x128xf32>
    %212 = tpu.matmul %211, %5, %cst_54 {dimension_numbers = #tpu.dot_dimension_numbers<[1], [0], [0], [1], [0, 0, 1, 1], [], []>} : vector<2x32xbf16>, vector<32x128xbf16>, vector<2x128xf32> -> vector<2x128xf32>
    %213 = arith.addf %85, %212 : vector<2x128xf32>
    %214 = math.tanh %213 : vector<2x128xf32>
    %215 = arith.negf %213 : vector<2x128xf32>
    %216 = math.exp %215 : vector<2x128xf32>
    %cst_55 = arith.constant 1.000000e+00 : f32
    %217 = vector.broadcast %cst_55 : f32 to vector<2x128xf32>
    %218 = arith.addf %217, %216 : vector<2x128xf32>
    %219 = arith.divf %217, %218 : vector<2x128xf32>
    %220 = arith.select %17, %214, %219 : vector<2x128xi1>, vector<2x128xf32>
    %221 = vector.extract_strided_slice %220 {offsets = [0, 0], sizes = [2, 32], strides = [1, 1]} : vector<2x128xf32> to vector<2x32xf32>
    %222 = vector.extract_strided_slice %220 {offsets = [0, 32], sizes = [2, 32], strides = [1, 1]} : vector<2x128xf32> to vector<2x32xf32>
    %223 = vector.extract_strided_slice %220 {offsets = [0, 64], sizes = [2, 32], strides = [1, 1]} : vector<2x128xf32> to vector<2x32xf32>
    %224 = vector.extract_strided_slice %220 {offsets = [0, 96], sizes = [2, 32], strides = [1, 1]} : vector<2x128xf32> to vector<2x32xf32>
    %225 = arith.mulf %222, %208 : vector<2x32xf32>
    %226 = arith.mulf %221, %223 : vector<2x32xf32>
    %227 = arith.addf %225, %226 : vector<2x32xf32>
    %228 = math.tanh %227 : vector<2x32xf32>
    %229 = arith.mulf %224, %228 : vector<2x32xf32>
    %230 = arith.truncf %229 : vector<2x32xf32> to vector<2x32xbf16>
    %cst_56 = arith.constant dense<0.000000e+00> : vector<2x128xf32>
    %231 = tpu.matmul %230, %5, %cst_56 {dimension_numbers = #tpu.dot_dimension_numbers<[1], [0], [0], [1], [0, 0, 1, 1], [], []>} : vector<2x32xbf16>, vector<32x128xbf16>, vector<2x128xf32> -> vector<2x128xf32>
    %232 = arith.addf %94, %231 : vector<2x128xf32>
    %233 = math.tanh %232 : vector<2x128xf32>
    %234 = arith.negf %232 : vector<2x128xf32>
    %235 = math.exp %234 : vector<2x128xf32>
    %cst_57 = arith.constant 1.000000e+00 : f32
    %236 = vector.broadcast %cst_57 : f32 to vector<2x128xf32>
    %237 = arith.addf %236, %235 : vector<2x128xf32>
    %238 = arith.divf %236, %237 : vector<2x128xf32>
    %239 = arith.select %17, %233, %238 : vector<2x128xi1>, vector<2x128xf32>
    %240 = vector.extract_strided_slice %239 {offsets = [0, 0], sizes = [2, 32], strides = [1, 1]} : vector<2x128xf32> to vector<2x32xf32>
    %241 = vector.extract_strided_slice %239 {offsets = [0, 32], sizes = [2, 32], strides = [1, 1]} : vector<2x128xf32> to vector<2x32xf32>
    %242 = vector.extract_strided_slice %239 {offsets = [0, 64], sizes = [2, 32], strides = [1, 1]} : vector<2x128xf32> to vector<2x32xf32>
    %243 = vector.extract_strided_slice %239 {offsets = [0, 96], sizes = [2, 32], strides = [1, 1]} : vector<2x128xf32> to vector<2x32xf32>
    %244 = arith.mulf %241, %227 : vector<2x32xf32>
    %245 = arith.mulf %240, %242 : vector<2x32xf32>
    %246 = arith.addf %244, %245 : vector<2x32xf32>
    %247 = math.tanh %246 : vector<2x32xf32>
    %248 = arith.mulf %243, %247 : vector<2x32xf32>
    %249 = arith.truncf %248 : vector<2x32xf32> to vector<2x32xbf16>
    %cst_58 = arith.constant dense<0.000000e+00> : vector<2x128xf32>
    %250 = tpu.matmul %249, %6, %cst_58 {dimension_numbers = #tpu.dot_dimension_numbers<[1], [0], [0], [1], [0, 0, 1, 1], [], []>} : vector<2x32xbf16>, vector<32x128xbf16>, vector<2x128xf32> -> vector<2x128xf32>
    %251 = vector.broadcast %7 : vector<1x128xf32> to vector<2x128xf32>
    %252 = arith.addf %250, %251 : vector<2x128xf32>
    %253 = math.tanh %252 : vector<2x128xf32>
    %254 = arith.negf %252 : vector<2x128xf32>
    %255 = math.exp %254 : vector<2x128xf32>
    %cst_59 = arith.constant 1.000000e+00 : f32
    %256 = vector.broadcast %cst_59 : f32 to vector<2x128xf32>
    %257 = arith.addf %256, %255 : vector<2x128xf32>
    %258 = arith.divf %256, %257 : vector<2x128xf32>
    %259 = arith.select %17, %253, %258 : vector<2x128xi1>, vector<2x128xf32>
    %260 = vector.extract_strided_slice %259 {offsets = [0, 0], sizes = [2, 32], strides = [1, 1]} : vector<2x128xf32> to vector<2x32xf32>
    %261 = vector.extract_strided_slice %259 {offsets = [0, 64], sizes = [2, 32], strides = [1, 1]} : vector<2x128xf32> to vector<2x32xf32>
    %262 = vector.extract_strided_slice %259 {offsets = [0, 96], sizes = [2, 32], strides = [1, 1]} : vector<2x128xf32> to vector<2x32xf32>
    %263 = arith.mulf %260, %261 : vector<2x32xf32>
    %264 = math.tanh %263 : vector<2x32xf32>
    %265 = arith.mulf %262, %264 : vector<2x32xf32>
    %266 = arith.truncf %265 : vector<2x32xf32> to vector<2x32xbf16>
    %cst_60 = arith.constant dense<0.000000e+00> : vector<2x128xf32>
    %267 = tpu.matmul %266, %6, %cst_60 {dimension_numbers = #tpu.dot_dimension_numbers<[1], [0], [0], [1], [0, 0, 1, 1], [], []>} : vector<2x32xbf16>, vector<32x128xbf16>, vector<2x128xf32> -> vector<2x128xf32>
    %268 = vector.broadcast %7 : vector<1x128xf32> to vector<2x128xf32>
    %269 = arith.addf %267, %268 : vector<2x128xf32>
    %270 = math.tanh %269 : vector<2x128xf32>
    %271 = arith.negf %269 : vector<2x128xf32>
    %272 = math.exp %271 : vector<2x128xf32>
    %cst_61 = arith.constant 1.000000e+00 : f32
    %273 = vector.broadcast %cst_61 : f32 to vector<2x128xf32>
    %274 = arith.addf %273, %272 : vector<2x128xf32>
    %275 = arith.divf %273, %274 : vector<2x128xf32>
    %276 = arith.select %17, %270, %275 : vector<2x128xi1>, vector<2x128xf32>
    %277 = vector.extract_strided_slice %276 {offsets = [0, 0], sizes = [2, 32], strides = [1, 1]} : vector<2x128xf32> to vector<2x32xf32>
    %278 = vector.extract_strided_slice %276 {offsets = [0, 64], sizes = [2, 32], strides = [1, 1]} : vector<2x128xf32> to vector<2x32xf32>
    %279 = vector.extract_strided_slice %276 {offsets = [0, 96], sizes = [2, 32], strides = [1, 1]} : vector<2x128xf32> to vector<2x32xf32>
    %280 = arith.mulf %277, %278 : vector<2x32xf32>
    %281 = math.tanh %280 : vector<2x32xf32>
    %282 = arith.mulf %279, %281 : vector<2x32xf32>
    %283 = arith.truncf %282 : vector<2x32xf32> to vector<2x32xbf16>
    %cst_62 = arith.constant dense<0.000000e+00> : vector<2x128xf32>
    %284 = tpu.matmul %283, %6, %cst_62 {dimension_numbers = #tpu.dot_dimension_numbers<[1], [0], [0], [1], [0, 0, 1, 1], [], []>} : vector<2x32xbf16>, vector<32x128xbf16>, vector<2x128xf32> -> vector<2x128xf32>
    %285 = vector.broadcast %7 : vector<1x128xf32> to vector<2x128xf32>
    %286 = arith.addf %284, %285 : vector<2x128xf32>
    %287 = math.tanh %286 : vector<2x128xf32>
    %288 = arith.negf %286 : vector<2x128xf32>
    %289 = math.exp %288 : vector<2x128xf32>
    %cst_63 = arith.constant 1.000000e+00 : f32
    %290 = vector.broadcast %cst_63 : f32 to vector<2x128xf32>
    %291 = arith.addf %290, %289 : vector<2x128xf32>
    %292 = arith.divf %290, %291 : vector<2x128xf32>
    %293 = arith.select %17, %287, %292 : vector<2x128xi1>, vector<2x128xf32>
    %294 = vector.extract_strided_slice %293 {offsets = [0, 0], sizes = [2, 32], strides = [1, 1]} : vector<2x128xf32> to vector<2x32xf32>
    %295 = vector.extract_strided_slice %293 {offsets = [0, 64], sizes = [2, 32], strides = [1, 1]} : vector<2x128xf32> to vector<2x32xf32>
    %296 = vector.extract_strided_slice %293 {offsets = [0, 96], sizes = [2, 32], strides = [1, 1]} : vector<2x128xf32> to vector<2x32xf32>
    %297 = arith.mulf %294, %295 : vector<2x32xf32>
    %298 = math.tanh %297 : vector<2x32xf32>
    %299 = arith.mulf %296, %298 : vector<2x32xf32>
    %300 = tpu.concatenate %265, %282, %299 in 0 : vector<2x32xf32>, vector<2x32xf32>, vector<2x32xf32> -> vector<6x32xf32>
    %301 = arith.truncf %300 : vector<6x32xf32> to vector<6x32xbf16>
    %cst_64 = arith.constant dense<0.000000e+00> : vector<6x64xf32>
    %302 = tpu.matmul %301, %8, %cst_64 {dimension_numbers = #tpu.dot_dimension_numbers<[1], [0], [0], [1], [0, 0, 1, 1], [], []>} : vector<6x32xbf16>, vector<32x64xbf16>, vector<6x64xf32> -> vector<6x64xf32>
    %303 = vector.broadcast %9 : vector<1x64xf32> to vector<6x64xf32>
    %304 = arith.addf %302, %303 : vector<6x64xf32>
    %cst_65 = arith.constant 0.000000e+00 : f32
    %305 = vector.broadcast %cst_65 : f32 to vector<6x64xf32>
    %306 = arith.maximumf %304, %305 : vector<6x64xf32>
    %307 = arith.truncf %306 : vector<6x64xf32> to vector<6x64xbf16>
    %cst_66 = arith.constant dense<0.000000e+00> : vector<6x8xf32>
    %308 = tpu.matmul %307, %10, %cst_66 {dimension_numbers = #tpu.dot_dimension_numbers<[1], [0], [0], [1], [0, 0, 1, 1], [], []>} : vector<6x64xbf16>, vector<64x8xbf16>, vector<6x8xf32> -> vector<6x8xf32>
    %309 = vector.broadcast %11 : vector<1x8xf32> to vector<6x8xf32>
    %310 = arith.addf %308, %309 : vector<6x8xf32>
    %311 = vector.extract_strided_slice %1 {offsets = [0, 7, 0], sizes = [2, 1, 4], strides = [1, 1, 1]} : vector<2x8x4xf32> to vector<2x1x4xf32>
    %312 = vector.shape_cast %311 : vector<2x1x4xf32> to vector<2x4xf32>
    %cst_67 = arith.constant 0.000000e+00 : f32
    %313 = vector.broadcast %cst_67 : f32 to vector<2x4xf32>
    %314 = tpu.concatenate %313, %312 in 1 : vector<2x4xf32>, vector<2x4xf32> -> vector<2x8xf32>
    %315 = vector.extract_strided_slice %310 {offsets = [0, 0], sizes = [2, 8], strides = [1, 1]} : vector<6x8xf32> to vector<2x8xf32>
    %316 = arith.addf %315, %314 : vector<2x8xf32>
    %317 = arith.mulf %316, %22 : vector<2x8xf32>
    %c0_68 = arith.constant 0 : index
    %c0_69 = arith.constant 0 : index
    %c0_70 = arith.constant 0 : index
    %318 = vector.load %arg12[%c0_68, %c0_69, %c0_70] : memref<2x3x8xf32, #tpu.memory_space<vmem>>, vector<2x1x8xf32>
    %319 = vector.shape_cast %318 : vector<2x1x8xf32> to vector<2x8xf32>
    %320 = vector.shape_cast %316 : vector<2x8xf32> to vector<2x1x8xf32>
    tpu.vector_store %arg12[%c0_68, %c0_69, %c0_70], %320 {strides = array<i32>} : memref<2x3x8xf32, #tpu.memory_space<vmem>>, vector<2x1x8xf32>,
    %321 = vector.extract_strided_slice %310 {offsets = [2, 0], sizes = [2, 8], strides = [1, 1]} : vector<6x8xf32> to vector<2x8xf32>
    %322 = arith.addf %321, %317 : vector<2x8xf32>
    %323 = arith.mulf %322, %22 : vector<2x8xf32>
    %c0_71 = arith.constant 0 : index
    %c1 = arith.constant 1 : index
    %c0_72 = arith.constant 0 : index
    %324 = vector.load %arg12[%c0_71, %c1, %c0_72] : memref<2x3x8xf32, #tpu.memory_space<vmem>>, vector<2x1x8xf32>
    %325 = vector.shape_cast %324 : vector<2x1x8xf32> to vector<2x8xf32>
    %326 = vector.shape_cast %322 : vector<2x8xf32> to vector<2x1x8xf32>
    tpu.vector_store %arg12[%c0_71, %c1, %c0_72], %326 {strides = array<i32>} : memref<2x3x8xf32, #tpu.memory_space<vmem>>, vector<2x1x8xf32>,
    %327 = vector.extract_strided_slice %310 {offsets = [4, 0], sizes = [2, 8], strides = [1, 1]} : vector<6x8xf32> to vector<2x8xf32>
    %328 = arith.addf %327, %323 : vector<2x8xf32>
    %c0_73 = arith.constant 0 : index
    %c2 = arith.constant 2 : index
    %c0_74 = arith.constant 0 : index
    %329 = vector.load %arg12[%c0_73, %c2, %c0_74] : memref<2x3x8xf32, #tpu.memory_space<vmem>>, vector<2x1x8xf32>
    %330 = vector.shape_cast %329 : vector<2x1x8xf32> to vector<2x8xf32>
    %331 = vector.shape_cast %328 : vector<2x8xf32> to vector<2x1x8xf32>
    tpu.vector_store %arg12[%c0_73, %c2, %c0_74], %331 {strides = array<i32>} : memref<2x3x8xf32, #tpu.memory_space<vmem>>, vector<2x1x8xf32>,
    return
  }
}

</mosaic_0001>

<bundles_post_ra>
// kernel: tpu_custom_call.1
= control target key start
LH: loop header
LB: loop body
LE: loop exit
PB: predicated region body
PF: predicated region fallthrough
CT: control target
= control target key end

     0   :  { %vm88_vm0 = vcmask 1043456   ;;  %vm83_vm1 = vcmask 1041409   ;;  %vm85_vm2 = vcmask 31744   ;;  %v1491_v27 = vmov 0   ;;  %s1493_s16 = smov 32   ;;  %s1908_s3 = inlined_call_operand.vmem [shape: f32[4,128], index: 3, kind: input, shape index: {}]   ;;  %s1909_s1 = inlined_call_operand.vmem [shape: f32[2,8,4], index: 1, kind: input, shape index: {}]   ;;  %s1910_s2 = inlined_call_operand.vmem [shape: f32[4,128], index: 2, kind: input, shape index: {}]   ;;  %s1911_s0 = inlined_call_operand.vmem [shape: f32[2,8,4], index: 0, kind: input, shape index: {}]   ;;  %s1912_s5 = inlined_call_operand.vmem [shape: bf16[32,128], index: 5, kind: input, shape index: {}]   ;;  %s1913_s4 = inlined_call_operand.vmem [shape: f32[1,128], index: 4, kind: input, shape index: {}]   ;;  %s1914_s6 = inlined_call_operand.vmem [shape: bf16[32,128], index: 6, kind: input, shape index: {}]   ;;  %s1915_s7 = inlined_call_operand.vmem [shape: f32[1,128], index: 7, kind: input, shape index: {}]   ;;  %s1916_s8 = inlined_call_operand.vmem [shape: bf16[32,64], index: 8, kind: input, shape index: {}]   ;;  %s1917_s9 = inlined_call_operand.vmem [shape: f32[1,64], index: 9, kind: input, shape index: {}]   ;;  %s1918_s10 = inlined_call_operand.vmem [shape: bf16[64,8], index: 10, kind: input, shape index: {}]   ;;  %s1919_s11 = inlined_call_operand.vmem [shape: f32[1,8], index: 11, kind: input, shape index: {}]   ;;  %s1920_s12 = inlined_call_operand.vmem [shape: f32[2,3,8], index: 12, kind: output, shape index: {}]  }
   0x1   :  { %v1565_v0 = vld [vmem:[%s1908_s3] sm:$0xf]  ;;  %v1575_v2 = vld [vmem:[%s1909_s1 + $0x8] sm:$0xff]  ;;  %v72_v49 = vlaneseq  ;;  %vm512_vm10 = vcmask 261120  }
   0x2   :  { %v1570_v1 = vld [vmem:[%s1909_s1] sm:$0xff]  ;;  %1288 = vmatpush.msk.msra.mxu1 %vm88_vm0, %v1565_v0  ;;  %1296 = vmatpush.msk.msra.mxu0 %vm88_vm0, %v1565_v0  ;;  %v82_v3 = vrot.slane %v1575_v2, 7  ;;  %v195_v5 = vrot.slane %v1575_v2, 1  ;;  %v1596_v7 = vld [vmem:[%s1911_s0 + $0x8] sm:$0xff]  ;;  %v297_v12 = vrot.slane %v1575_v2, 3  ;;  %v399_v20 = vrot.slane %v1575_v2, 5 }
   0x3   :  { %v194_v4 = vrot.slane %v1570_v1, 2  ;;  %v1587_v6 = vld [vmem:[%s1910_s2] sm:$0xf]  ;;  %1292 = vmatpush.msk.msra.mxu2 %vm88_vm0, %v1565_v0  ;;  %v114_v10 = vrot.slane %v1596_v7, 7  ;;  %v296_v11 = vrot.slane %v1570_v1, 4  ;;  %v1629_v16 = vld [vmem:[%s1912_s5 + $0x8] sm:$0xff] }
   0x4   :  { %1304 = vmatpush.msk.msrb.mxu0 %vm88_vm0, %v1565_v0  ;;  %1290 = vmatpush.msk.msrb.mxu1 %vm88_vm0, %v1587_v6  ;;  %v84_v8 = vsel %vm83_vm1, %v82_v3, %v1570_v1  ;;  %v1617_v13 = vld [vmem:[%s1911_s0] sm:$0xff]  ;;  %v220_v18 = vrot.slane %v1596_v7, 1  ;;  %v398_v19 = vrot.slane %v1570_v1, 6  ;;  %v322_v25 = vrot.slane %v1596_v7, 3  ;;  %s1495_s2 = smov 4  }
   0x5   :  { %v196_v9 = vsel %vm83_vm1, %v195_v5, %v194_v4  ;;  %1294 = vmatpush.msk.msra.mxu3 %vm88_vm0, %v1587_v6  ;;  %1289 = vmatmul.msk.f32.vlgmr.msra.gmra.mxu1 %vm85_vm2, %v84_v8  ;;  %v115_v14 = vsel %vm83_vm1, %v114_v10, %v1617_v13  ;;  %v298_v15 = vsel %vm83_vm1, %v297_v12, %v296_v11  ;;  %v219_v17 = vrot.slane %v1617_v13, 2  ;;  %v1641_v21 = vld [vmem:[%s1912_s5] sm:$0xff] }
   0x6   :  { %1297 = vmatmul.msk.f32.vlgmr.msra.gmra.mxu0 %vm85_vm2, %v196_v9  ;;  %1298 = vmatpush.msk.msra.mxu1 %vm88_vm0, %v1587_v6  ;;  %v400_v23 = vsel %vm83_vm1, %v399_v20, %v398_v19  ;;  %v321_v24 = vrot.slane %v1617_v13, 4  ;;  %v423_v28 = vrot.slane %v1617_v13, 6  ;;  %v424_v29 = vrot.slane %v1596_v7, 5  ;;  %v1673_v39 = vld [vmem:[%s1913_s4] ss:$0 sm:$0xff]  ;;  %s1492_s4 = smov 64  }
   0x7   :  { %1312 = vmatpush.msk.msra.mxu0 %vm88_vm0, %v1565_v0  ;;  %1300 = vmatpush.msk.msrb.mxu2 %vm88_vm0, %v1565_v0  ;;  %v221_v22 = vsel %vm83_vm1, %v220_v18, %v219_v17  ;;  %v1678_v51 = vand.u32 127, %v72_v49  ;;  %v145_v11 = vrot.slane %v1570_v1, 1  ;;  %v169_v12 = vrot.slane %v1617_v13, 1 }
   0x8   :  { %1302 = vmatpush.msk.msrb.mxu3 %vm88_vm0, %v1587_v6  ;;  %v323_v26 = vsel %vm83_vm1, %v322_v25, %v321_v24  ;;  %v425_v30 = vsel %vm83_vm1, %v424_v29, %v423_v28 }
   0x9   :  { %vm74_vm3 = vcmp.ge.s32.totalorder %v1678_v51, 64  ;;  %vm75_vm4 = vcmp.lt.s32.totalorder %v1678_v51, 96 }
   0xa   :  { %vm1682_vm6 = vmand %vm74_vm3, %vm75_vm4 }
   0xd   :  { %1291 = vmatmul.msk.f32.vlgmr.msrb.gmra.mxu1 %vm85_vm2, %v115_v14  ;;  %v146_v14 = vsel %vm83_vm1, %v1575_v2, %v145_v11  ;;  %v450_v11 = vrot.slane %v1575_v2, 6 }
   0xe   :  { %1305 = vmatmul.msk.f32.vlgmr.msrb.gmra.mxu0 %vm85_vm2, %v298_v15  ;;  %1306 = vmatpush.msk.msrb.mxu1 %vm88_vm0, %v1587_v6  ;;  %v170_v15 = vsel %vm83_vm1, %v1596_v7, %v169_v12  ;;  %v474_v12 = vrot.slane %v1617_v13, 7 }
   0xf   :  { %522 = vmatpush.bf16.msrb.mxu0 %v1629_v16  ;;  %1293 = vmatmul.msk.f32.vlgmr.msra.gmra.mxu2 %vm85_vm2, %v146_v14  ;;  %v475_v14 = vrot.slane %v1596_v7, 6 }
  0x10   :  { %1295 = vmatmul.msk.f32.vlgmr.msra.gmra.mxu3 %vm85_vm2, %v170_v15  ;;  %1308 = vmatpush.msk.msra.mxu2 %vm88_vm0, %v1565_v0 }
  0x11   :  { %1310 = vmatpush.msk.msra.mxu3 %vm88_vm0, %v1587_v6 }
  0x13   :  { %523 = vmatpush.bf16.msrb.mxu0 %v1641_v21 }
  0x15   :  { %1299 = vmatmul.msk.f32.vlgmr.msra.gmra.mxu1 %vm85_vm2, %v221_v22 }
  0x16   :  { %1313 = vmatmul.msk.f32.vlgmr.msra.gmra.mxu0 %vm85_vm2, %v400_v23  ;;  %1314 = vmatpush.msk.msra.mxu1 %vm88_vm0, %v1587_v6 }
  0x17   :  { %758 = vmatpush.bf16.msra.mxu0 %v1629_v16 }
  0x1b   :  { %759 = vmatpush.bf16.msra.mxu0 %v1641_v21 }
  0x1d   :  { %1307 = vmatmul.msk.f32.vlgmr.msrb.gmra.mxu1 %vm85_vm2, %v323_v26 }
  0x1e   :  { %524 = vmatmul.bf16.vlgmr.msrb.gmra.mxu0 %v1491_v27  ;;  %581 = vmatpush.bf16.msrb.mxu1 %v1629_v16 }
  0x22   :  { %582 = vmatpush.bf16.msrb.mxu1 %v1641_v21 }
  0x25   :  { %1315 = vmatmul.msk.f32.vlgmr.msra.gmra.mxu1 %vm85_vm2, %v425_v30 }
  0x26   :  { %817 = vmatpush.bf16.msra.mxu1 %v1629_v16 }
  0x2a   :  { %818 = vmatpush.bf16.msra.mxu1 %v1641_v21 }
  0x82   :  { %v109_v31 = vpop.f32.mrf.mxu1 }
  0x83   :  { %v216_v32 = vpop.f32.mrf.mxu0 }
  0x8a   :  { %v138_v33 = vpop.f32.mrf.mxu1 }
  0x8b   :  { %v318_v34 = vpop.f32.mrf.mxu0  ;;  %v139_v38 = vadd.f32 %v138_v33, %v109_v31 }
  0x8d   :  { %v144_v40 = vadd.f32 %v1673_v39, %v139_v38 }
  0x92   :  { %v241_v35 = vpop.f32.mrf.mxu1  ;;  %v166_v22 = vpop.f32.mrf.mxu2 }
  0x93   :  { %v1666_v36 = vpop.f32.mrf.mxu0  ;;  %v1668_v37 = vadd.f32 %v241_v35, %v216_v32  ;;  %v190_v23 = vpop.f32.mrf.mxu3 }
  0x94   :  { %v191_v25 = vadd.f32 %v190_v23, %v166_v22 }
  0x96   :  { %v193_v26 = vadd.f32 %v1673_v39, %v191_v25 }
  0x9a   :  { %v343_v41 = vpop.f32.mrf.mxu1 }
  0x9b   :  { %v525_v42 = vpop.f32.mrf.mxu0  ;;  %v1676_v43 = vadd.f32 %v343_v41, %v318_v34 }
  0x9c   :  { %v529_v44 = vadd.f32 %v525_v42, %v144_v40 }
  0x9e   :  { %v1328_v45 = vmul.f32 -1.442695, %v529_v44 }
  0xa0   :  { %1403 = vpow2.f32 %v1328_v45 }
  0xa2   :  { %v1705_v24 = vpop.f32.mrf.mxu1 }
  0xa3   :  { %v527_v46 = vpop.f32.mrf.mxu0 }
  0xa6   :  { %v1404_v47 = vpop.eup %1403 }
  0xa7   :  { %v534_v48 = vadd.f32 1.0, %v1404_v47 }
  0xa9   :  { %1405 = vrcp.f32 %v534_v48  ;;  %v546_v54 = vand.u32 2147483648, %v534_v48  ;;  %v544_v56 = vand.u32 2147483647, %v534_v48  ;;  %vm540_vm7 = vweird.f32 %v534_v48 }
  0xaa   :  { %1407 = vtanh.f32 %v529_v44 }
  0xab   :  { %v547_v59 = vor.u32 1.1754944e-38, %v546_v54  ;;  %vm545_vm9 = vcmp.eq.f32.partialorder %v544_v56, 8.507059e+37  ;;  %v245_v56 = vrot.slane %v1570_v1, 3 }
  0xaf   :  { %v1406_v50 = vpop.eup %1405 }
  0xb0   :  { %v536_v52 = vmul.f32 %v1406_v50, %v534_v48  ;;  %vm541_vm5 = vweird.f32 %v1406_v50  ;;  %v1408_v61 = vpop.eup %1407 }
  0xb1   :  { %vm542_vm8 = vmor %vm540_vm7, %vm541_vm5 }
  0xb2   :  { %v537_v53 = vsub.f32 1.0, %v536_v52 }
  0xb4   :  { %v538_v55 = vmul.f32 %v1406_v50, %v537_v53 }
  0xb6   :  { %v539_v58 = vadd.f32 %v1406_v50, %v538_v55 }
  0xb8   :  { %v543_v60 = vsel %vm542_vm8, %v1406_v50, %v539_v58  ;;  %v246_v58 = vrot.slane %v1575_v2, 2 }
  0xb9   :  { %v548_v62 = vsel %vm545_vm9, %v547_v59, %v543_v60  ;;  %v270_v59 = vrot.slane %v1617_v13, 3  ;;  %v271_v60 = vrot.slane %v1596_v7, 2 }
  0xba   :  { %v550_v63 = vsel %vm1682_vm6, %v1408_v61, %v548_v62  ;;  %v247_v61 = vsel %vm83_vm1, %v246_v58, %v245_v56 }
  0xbb   :  { %553 = vrot.lane.b32.xlu0 %v550_v63, %s1492_s4  ;;  %v551_v5 = vmul.f32 0.0, %v550_v63  ;;  %v272_v62 = vsel %vm83_vm1, %v271_v60, %v270_v59  ;;  %1301 = vmatmul.msk.f32.vlgmr.msrb.gmra.mxu2 %vm85_vm2, %v247_v61 }
  0xbc   :  { %1303 = vmatmul.msk.f32.vlgmr.msrb.gmra.mxu3 %vm85_vm2, %v272_v62  ;;  %1316 = vmatpush.msk.msrb.mxu2 %vm88_vm0, %v1565_v0 }
  0xbd   :  { %1318 = vmatpush.msk.msrb.mxu3 %vm88_vm0, %v1587_v6  ;;  %v476_v6 = vsel %vm83_vm1, %v475_v14, %v474_v12 }
 0x12d   :  { %v554_v3 = vpop.permute.xlu0 %553 }
 0x12e   :  { %v556_v4 = vmul.f32 %v554_v3, %v550_v63  ;;  %v348_v3 = vrot.slane %v1575_v2, 4 }
 0x130   :  { %558 = vrot.lane.b32.xlu0 %v556_v4, %s1493_s16  ;;  %v372_v4 = vrot.slane %v1617_v13, 5 }
 0x13e   :  { %v267_v13 = vpop.f32.mrf.mxu2 }
 0x13f   :  { %v292_v15 = vpop.f32.mrf.mxu3 }
 0x140   :  { %v293_v58 = vadd.f32 %v292_v15, %v267_v13 }
 0x142   :  { %v295_v59 = vadd.f32 %v1673_v39, %v293_v58 }
 0x1a2   :  { %v559_v8 = vpop.permute.xlu0 %558 }
 0x1a3   :  { %v561_v9 = vadd.f32 %v559_v8, %v551_v5  ;;  %v373_v5 = vrot.slane %v1596_v7, 4 }
 0x1a5   :  { %1409 = vtanh.f32 %v561_v9 }
 0x1ab   :  { %v1410_v10 = vpop.eup %1409 }
 0x1ac   :  { %564 = vrot.lane.b32.xlu1 %v1410_v10, %s1492_s4  ;;  %v449_v10 = vrot.slane %v1570_v1, 7 }
 0x1ae   :  { %v1743_v0 = vsel %vm83_vm1, %v450_v11, %v449_v10 }
 0x21e   :  { %v565_v17 = vpop.permute.xlu1 %564 }
 0x21f   :  { %v567_v18 = vmul.f32 %v565_v17, %v550_v63  ;;  %v347_v63 = vrot.slane %v1570_v1, 5 }
 0x221   :  { %v568_v19 = vpack.c.bf16 %v567_v18, %v567_v18  ;;  %v349_v8 = vsel %vm83_vm1, %v348_v3, %v347_v63 }
 0x222   :  { %1309 = vmatmul.msk.f32.vlgmr.msra.gmra.mxu2 %vm85_vm2, %v349_v8 }
 0x223   :  { %570 = vrot.lane.b32.xlu1 %v568_v19, %s1493_s16  ;;  %640 = vmatpush.bf16.msra.mxu2 %v1629_v16 }
 0x227   :  { %641 = vmatpush.bf16.msra.mxu2 %v1641_v21 }
 0x22a   :  { %1317 = vmatmul.msk.f32.vlgmr.msrb.gmra.mxu2 %vm85_vm2, %v1743_v0 }
 0x22b   :  { %876 = vmatpush.bf16.msrb.mxu2 %v1629_v16 }
 0x22f   :  { %877 = vmatpush.bf16.msrb.mxu2 %v1641_v21 }
 0x295   :  { %v571_v20 = vpop.permute.xlu1 %570 }
 0x296   :  { %1329 = vmatmul.msk.bf16.vlgmr.msrb.gmra.mxu1 %vm512_vm10, %v571_v20 }
 0x2a5   :  { %v369_v17 = vpop.f32.mrf.mxu2 }
 0x2ad   :  { %v1759_v22 = vpop.f32.mrf.mxu2 }
 0x313   :  { %v584_v27 = vpop.f32.mrf.mxu1 }
 0x314   :  { %v588_v28 = vadd.f32 %v584_v27, %v193_v26 }
 0x316   :  { %v1330_v29 = vmul.f32 -1.442695, %v588_v28 }
 0x318   :  { %1411 = vpow2.f32 %v1330_v29 }
 0x31b   :  { %v586_v30 = vpop.f32.mrf.mxu1 }
 0x31e   :  { %v1412_v31 = vpop.eup %1411 }
 0x31f   :  { %v593_v32 = vadd.f32 1.0, %v1412_v31 }
 0x321   :  { %1413 = vrcp.f32 %v593_v32  ;;  %v605_v38 = vand.u32 2147483648, %v593_v32  ;;  %v603_v41 = vand.u32 2147483647, %v593_v32  ;;  %vm599_vm12 = vweird.f32 %v593_v32 }
 0x322   :  { %1415 = vtanh.f32 %v588_v28 }
 0x323   :  { %v606_v44 = vor.u32 1.1754944e-38, %v605_v38  ;;  %vm604_vm14 = vcmp.eq.f32.partialorder %v603_v41, 8.507059e+37 }
 0x327   :  { %v1414_v33 = vpop.eup %1413 }
 0x328   :  { %v595_v34 = vmul.f32 %v1414_v33, %v593_v32  ;;  %vm600_vm11 = vweird.f32 %v1414_v33  ;;  %v1416_v46 = vpop.eup %1415 }
 0x329   :  { %vm601_vm13 = vmor %vm599_vm12, %vm600_vm11 }
 0x32a   :  { %v596_v35 = vsub.f32 1.0, %v595_v34 }
 0x32c   :  { %v597_v40 = vmul.f32 %v1414_v33, %v596_v35 }
 0x32e   :  { %v598_v42 = vadd.f32 %v1414_v33, %v597_v40 }
 0x330   :  { %v602_v45 = vsel %vm601_vm13, %v1414_v33, %v598_v42 }
 0x331   :  { %v607_v47 = vsel %vm604_vm14, %v606_v44, %v602_v45 }
 0x332   :  { %v609_v48 = vsel %vm1682_vm6, %v1416_v46, %v607_v47 }
 0x333   :  { %612 = vrot.lane.b32.xlu2 %v609_v48, %s1492_s4  ;;  %v610_v52 = vmul.f32 %v609_v48, %v561_v9  ;;  %v374_v9 = vsel %vm83_vm1, %v373_v5, %v372_v4 }
 0x334   :  { %1311 = vmatmul.msk.f32.vlgmr.msra.gmra.mxu3 %vm85_vm2, %v374_v9 }
 0x335   :  { %699 = vmatpush.bf16.msra.mxu3 %v1629_v16 }
 0x339   :  { %700 = vmatpush.bf16.msra.mxu3 %v1641_v21 }
 0x33c   :  { %1319 = vmatmul.msk.f32.vlgmr.msrb.gmra.mxu3 %vm85_vm2, %v476_v6 }
 0x33d   :  { %935 = vmatpush.bf16.msrb.mxu3 %v1629_v16  ;;  %v244_v16 = vadd.f32 %v1673_v39, %v1668_v37 }
 0x341   :  { %936 = vmatpush.bf16.msrb.mxu3 %v1641_v21 }
 0x38d   :  { %v613_v49 = vpop.permute.xlu2 %612 }
 0x38e   :  { %v615_v50 = vmul.f32 %v613_v49, %v609_v48 }
 0x390   :  { %617 = vrot.lane.b32.xlu2 %v615_v50, %s1493_s16 }
 0x3b7   :  { %v394_v18 = vpop.f32.mrf.mxu3 }
 0x3b8   :  { %v1756_v19 = vadd.f32 %v394_v18, %v369_v17 }
 0x3bf   :  { %v1771_v56 = vpop.f32.mrf.mxu3 }
 0x3ea   :  { %v618_v53 = vpop.permute.xlu2 %617 }
 0x3eb   :  { %v1712_v54 = vadd.f32 %v618_v53, %v610_v52 }
 0x3ed   :  { %1417 = vtanh.f32 %v1712_v54 }
 0x3f3   :  { %v1418_v55 = vpop.eup %1417 }
 0x3f4   :  { %623 = vrot.lane.b32.xlu0 %v1418_v55, %s1492_s4 }
 0x466   :  { %v624_v1 = vpop.permute.xlu0 %623 }
 0x467   :  { %v626_v2 = vmul.f32 %v624_v1, %v609_v48 }
 0x469   :  { %v627_v7 = vpack.c.bf16 %v626_v2, %v626_v2 }
 0x46b   :  { %629 = vrot.lane.b32.xlu1 %v627_v7, %s1493_s16 }
 0x4dd   :  { %v630_v20 = vpop.permute.xlu1 %629 }
 0x4de   :  { %1331 = vmatmul.msk.bf16.vlgmr.msra.gmra.mxu2 %vm512_vm10, %v630_v20 }
 0x561   :  { %v643_v21 = vpop.f32.mrf.mxu2 }
 0x562   :  { %v647_v23 = vadd.f32 %v643_v21, %v244_v16 }
 0x564   :  { %v1332_v25 = vmul.f32 -1.442695, %v647_v23 }
 0x566   :  { %1419 = vpow2.f32 %v1332_v25 }
 0x569   :  { %v645_v26 = vpop.f32.mrf.mxu2 }
 0x56c   :  { %v1420_v27 = vpop.eup %1419 }
 0x56d   :  { %v652_v28 = vadd.f32 1.0, %v1420_v27  ;;  %v346_v27 = vadd.f32 %v1673_v39, %v1676_v43 }
 0x56f   :  { %1421 = vrcp.f32 %v652_v28  ;;  %v664_v32 = vand.u32 2147483648, %v652_v28  ;;  %v662_v34 = vand.u32 2147483647, %v652_v28  ;;  %vm658_vm1 = vweird.f32 %v652_v28 }
 0x570   :  { %1423 = vtanh.f32 %v647_v23 }
 0x571   :  { %v665_v37 = vor.u32 1.1754944e-38, %v664_v32  ;;  %vm663_vm4 = vcmp.eq.f32.partialorder %v662_v34, 8.507059e+37 }
 0x575   :  { %v1422_v29 = vpop.eup %1421 }
 0x576   :  { %v654_v30 = vmul.f32 %v1422_v29, %v652_v28  ;;  %vm659_vm15 = vweird.f32 %v1422_v29  ;;  %v1424_v40 = vpop.eup %1423 }
 0x577   :  { %vm660_vm3 = vmor %vm658_vm1, %vm659_vm15 }
 0x578   :  { %v655_v31 = vsub.f32 1.0, %v654_v30 }
 0x57a   :  { %v656_v33 = vmul.f32 %v1422_v29, %v655_v31 }
 0x57c   :  { %v657_v35 = vadd.f32 %v1422_v29, %v656_v33 }
 0x57e   :  { %v661_v38 = vsel %vm660_vm3, %v1422_v29, %v657_v35 }
 0x57f   :  { %v666_v41 = vsel %vm663_vm4, %v665_v37, %v661_v38 }
 0x580   :  { %v668_v42 = vsel %vm1682_vm6, %v1424_v40, %v666_v41 }
 0x581   :  { %671 = vrot.lane.b32.xlu2 %v668_v42, %s1492_s4  ;;  %v669_v46 = vmul.f32 %v668_v42, %v1712_v54 }
 0x5db   :  { %v672_v44 = vpop.permute.xlu2 %671 }
 0x5dc   :  { %v674_v45 = vmul.f32 %v672_v44, %v668_v42 }
 0x5de   :  { %676 = vrot.lane.b32.xlu0 %v674_v45, %s1493_s16 }
 0x650   :  { %v677_v47 = vpop.permute.xlu0 %676 }
 0x651   :  { %v679_v48 = vadd.f32 %v677_v47, %v669_v46 }
 0x653   :  { %1425 = vtanh.f32 %v679_v48 }
 0x659   :  { %v1426_v49 = vpop.eup %1425 }
 0x65a   :  { %682 = vrot.lane.b32.xlu1 %v1426_v49, %s1492_s4 }
 0x6cc   :  { %v683_v50 = vpop.permute.xlu1 %682 }
 0x6cd   :  { %v685_v52 = vmul.f32 %v683_v50, %v668_v42 }
 0x6cf   :  { %v686_v53 = vpack.c.bf16 %v685_v52, %v685_v52 }
 0x6d1   :  { %688 = vrot.lane.b32.xlu2 %v686_v53, %s1493_s16 }
 0x72b   :  { %v689_v55 = vpop.permute.xlu2 %688 }
 0x72c   :  { %1333 = vmatmul.msk.bf16.vlgmr.msra.gmra.mxu3 %vm512_vm10, %v689_v55 }
 0x7af   :  { %v702_v54 = vpop.f32.mrf.mxu3 }
 0x7b0   :  { %v706_v60 = vadd.f32 %v702_v54, %v295_v59 }
 0x7b2   :  { %v1334_v61 = vmul.f32 -1.442695, %v706_v60 }
 0x7b4   :  { %1427 = vpow2.f32 %v1334_v61  ;;  %v397_v61 = vadd.f32 %v1673_v39, %v1756_v19 }
 0x7b7   :  { %v704_v62 = vpop.f32.mrf.mxu3 }
 0x7ba   :  { %v1428_v63 = vpop.eup %1427 }
 0x7bb   :  { %v711_v3 = vadd.f32 1.0, %v1428_v63 }
 0x7bd   :  { %1429 = vrcp.f32 %v711_v3  ;;  %v723_v9 = vand.u32 2147483648, %v711_v3  ;;  %v721_v11 = vand.u32 2147483647, %v711_v3  ;;  %vm717_vm7 = vweird.f32 %v711_v3 }
 0x7be   :  { %1431 = vtanh.f32 %v706_v60 }
 0x7bf   :  { %v724_v14 = vor.u32 1.1754944e-38, %v723_v9  ;;  %vm722_vm9 = vcmp.eq.f32.partialorder %v721_v11, 8.507059e+37 }
 0x7c3   :  { %v1430_v4 = vpop.eup %1429 }
 0x7c4   :  { %v713_v5 = vmul.f32 %v1430_v4, %v711_v3  ;;  %vm718_vm5 = vweird.f32 %v1430_v4  ;;  %v1432_v1 = vpop.eup %1431 }
 0x7c5   :  { %vm719_vm8 = vmor %vm717_vm7, %vm718_vm5 }
 0x7c6   :  { %v714_v8 = vsub.f32 1.0, %v713_v5 }
 0x7c8   :  { %v715_v10 = vmul.f32 %v1430_v4, %v714_v8 }
 0x7ca   :  { %v716_v12 = vadd.f32 %v1430_v4, %v715_v10 }
 0x7cc   :  { %v720_v6 = vsel %vm719_vm8, %v1430_v4, %v716_v12 }
 0x7cd   :  { %v725_v2 = vsel %vm722_vm9, %v724_v14, %v720_v6 }
 0x7ce   :  { %v727_v7 = vsel %vm1682_vm6, %v1432_v1, %v725_v2 }
 0x7cf   :  { %730 = vrot.lane.b32.xlu0 %v727_v7, %s1492_s4  ;;  %v728_v17 = vmul.f32 %v727_v7, %v679_v48 }
 0x841   :  { %v731_v13 = vpop.permute.xlu0 %730 }
 0x842   :  { %v733_v15 = vmul.f32 %v731_v13, %v727_v7 }
 0x844   :  { %735 = vrot.lane.b32.xlu1 %v733_v15, %s1493_s16 }
 0x8b6   :  { %v736_v18 = vpop.permute.xlu1 %735 }
 0x8b7   :  { %v738_v20 = vadd.f32 %v736_v18, %v728_v17 }
 0x8b9   :  { %1433 = vtanh.f32 %v738_v20 }
 0x8bf   :  { %v1434_v16 = vpop.eup %1433 }
 0x8c0   :  { %741 = vrot.lane.b32.xlu2 %v1434_v16, %s1492_s4 }
 0x91a   :  { %v742_v21 = vpop.permute.xlu2 %741 }
 0x91b   :  { %v744_v23 = vmul.f32 %v742_v21, %v727_v7 }
 0x91d   :  { %v745_v25 = vpack.c.bf16 %v744_v23, %v744_v23 }
 0x91f   :  { %747 = vrot.lane.b32.xlu0 %v745_v25, %s1493_s16 }
 0x991   :  { %v748_v26 = vpop.permute.xlu0 %747 }
 0x992   :  { %1335 = vmatmul.msk.bf16.vlgmr.msra.gmra.mxu0 %vm512_vm10, %v748_v26 }
 0xa0f   :  { %v761_v28 = vpop.f32.mrf.mxu0 }
 0xa10   :  { %v765_v29 = vadd.f32 %v761_v28, %v346_v27 }
 0xa12   :  { %v1336_v30 = vmul.f32 -1.442695, %v765_v29 }
 0xa14   :  { %1435 = vpow2.f32 %v1336_v30 }
 0xa17   :  { %v763_v31 = vpop.f32.mrf.mxu0 }
 0xa1a   :  { %v1436_v32 = vpop.eup %1435 }
 0xa1b   :  { %v770_v33 = vadd.f32 1.0, %v1436_v32 }
 0xa1d   :  { %1437 = vrcp.f32 %v770_v33  ;;  %v782_v38 = vand.u32 2147483648, %v770_v33  ;;  %v780_v41 = vand.u32 2147483647, %v770_v33  ;;  %vm776_vm12 = vweird.f32 %v770_v33 }
 0xa1e   :  { %1439 = vtanh.f32 %v765_v29  ;;  %v446_v29 = vadd.f32 %v1705_v24, %v1666_v36 }
 0xa1f   :  { %v783_v43 = vor.u32 1.1754944e-38, %v782_v38  ;;  %vm781_vm14 = vcmp.eq.f32.partialorder %v780_v41, 8.507059e+37 }
 0xa20   :  { %v448_v30 = vadd.f32 %v1673_v39, %v446_v29 }
 0xa23   :  { %v1438_v34 = vpop.eup %1437 }
 0xa24   :  { %v772_v35 = vmul.f32 %v1438_v34, %v770_v33  ;;  %vm777_vm11 = vweird.f32 %v1438_v34  ;;  %v1440_v45 = vpop.eup %1439 }
 0xa25   :  { %vm778_vm13 = vmor %vm776_vm12, %vm777_vm11 }
 0xa26   :  { %v773_v37 = vsub.f32 1.0, %v772_v35 }
 0xa28   :  { %v774_v40 = vmul.f32 %v1438_v34, %v773_v37 }
 0xa2a   :  { %v775_v42 = vadd.f32 %v1438_v34, %v774_v40 }
 0xa2c   :  { %v779_v44 = vsel %vm778_vm13, %v1438_v34, %v775_v42 }
 0xa2d   :  { %v784_v46 = vsel %vm781_vm14, %v783_v43, %v779_v44 }
 0xa2e   :  { %v786_v47 = vsel %vm1682_vm6, %v1440_v45, %v784_v46 }
 0xa2f   :  { %789 = vrot.lane.b32.xlu1 %v786_v47, %s1492_s4  ;;  %v787_v50 = vmul.f32 %v786_v47, %v738_v20 }
 0xaa1   :  { %v790_v48 = vpop.permute.xlu1 %789 }
 0xaa2   :  { %v792_v49 = vmul.f32 %v790_v48, %v786_v47 }
 0xaa4   :  { %794 = vrot.lane.b32.xlu2 %v792_v49, %s1493_s16 }
 0xafe   :  { %v795_v52 = vpop.permute.xlu2 %794 }
 0xaff   :  { %v797_v53 = vadd.f32 %v795_v52, %v787_v50 }
 0xb01   :  { %1441 = vtanh.f32 %v797_v53 }
 0xb07   :  { %v1442_v55 = vpop.eup %1441 }
 0xb08   :  { %800 = vrot.lane.b32.xlu0 %v1442_v55, %s1492_s4 }
 0xb7a   :  { %v801_v58 = vpop.permute.xlu0 %800 }
 0xb7b   :  { %v803_v59 = vmul.f32 %v801_v58, %v786_v47 }
 0xb7d   :  { %v804_v54 = vpack.c.bf16 %v803_v59, %v803_v59 }
 0xb7f   :  { %806 = vrot.lane.b32.xlu1 %v804_v54, %s1493_s16 }
 0xbf1   :  { %v807_v60 = vpop.permute.xlu1 %806 }
 0xbf2   :  { %1337 = vmatmul.msk.bf16.vlgmr.msra.gmra.mxu1 %vm512_vm10, %v807_v60 }
 0xc6f   :  { %v820_v62 = vpop.f32.mrf.mxu1 }
 0xc70   :  { %v824_v63 = vadd.f32 %v820_v62, %v397_v61  ;;  %v497_v62 = vadd.f32 %v1771_v56, %v1759_v22 }
 0xc72   :  { %v1338_v3 = vmul.f32 -1.442695, %v824_v63 }
 0xc74   :  { %1443 = vpow2.f32 %v1338_v3 }
 0xc77   :  { %v822_v4 = vpop.f32.mrf.mxu1 }
 0xc7a   :  { %v1444_v5 = vpop.eup %1443 }
 0xc7b   :  { %v829_v8 = vadd.f32 1.0, %v1444_v5 }
 0xc7d   :  { %1445 = vrcp.f32 %v829_v8  ;;  %v841_v12 = vand.u32 2147483648, %v829_v8  ;;  %v839_v6 = vand.u32 2147483647, %v829_v8  ;;  %vm835_vm1 = vweird.f32 %v829_v8 }
 0xc7e   :  { %1447 = vtanh.f32 %v824_v63  ;;  %v499_v63 = vadd.f32 %v1673_v39, %v497_v62 }
 0xc7f   :  { %v842_v19 = vor.u32 1.1754944e-38, %v841_v12  ;;  %vm840_vm4 = vcmp.eq.f32.partialorder %v839_v6, 8.507059e+37 }
 0xc83   :  { %v1446_v9 = vpop.eup %1445 }
 0xc84   :  { %v831_v10 = vmul.f32 %v1446_v9, %v829_v8  ;;  %vm836_vm15 = vweird.f32 %v1446_v9  ;;  %v1448_v7 = vpop.eup %1447 }
 0xc85   :  { %vm837_vm3 = vmor %vm835_vm1, %vm836_vm15 }
 0xc86   :  { %v832_v11 = vsub.f32 1.0, %v831_v10 }
 0xc88   :  { %v833_v14 = vmul.f32 %v1446_v9, %v832_v11 }
 0xc8a   :  { %v834_v1 = vadd.f32 %v1446_v9, %v833_v14 }
 0xc8c   :  { %v838_v2 = vsel %vm837_vm3, %v1446_v9, %v834_v1 }
 0xc8d   :  { %v843_v13 = vsel %vm840_vm4, %v842_v19, %v838_v2 }
 0xc8e   :  { %v845_v15 = vsel %vm1682_vm6, %v1448_v7, %v843_v13 }
 0xc8f   :  { %848 = vrot.lane.b32.xlu2 %v845_v15, %s1492_s4  ;;  %v846_v20 = vmul.f32 %v845_v15, %v797_v53 }
 0xce9   :  { %v849_v17 = vpop.permute.xlu2 %848 }
 0xcea   :  { %v851_v18 = vmul.f32 %v849_v17, %v845_v15 }
 0xcec   :  { %853 = vrot.lane.b32.xlu0 %v851_v18, %s1493_s16 }
 0xd5e   :  { %v854_v16 = vpop.permute.xlu0 %853 }
 0xd5f   :  { %v856_v21 = vadd.f32 %v854_v16, %v846_v20 }
 0xd61   :  { %1449 = vtanh.f32 %v856_v21 }
 0xd67   :  { %v1450_v23 = vpop.eup %1449 }
 0xd68   :  { %859 = vrot.lane.b32.xlu1 %v1450_v23, %s1492_s4  ;;  %v1386_v23 = vld [vmem:[%s1914_s6 + $0x8] sm:$0xff] }
 0xd69   :  { %1009 = vmatpush.bf16.msrb.mxu0 %v1386_v23  ;;  %1061 = vmatpush.bf16.msrb.mxu1 %v1386_v23 }
 0xd6a   :  { %1113 = vmatpush.bf16.msra.mxu2 %v1386_v23 }
 0xdda   :  { %v860_v25 = vpop.permute.xlu1 %859 }
 0xddb   :  { %v862_v26 = vmul.f32 %v860_v25, %v845_v15  ;;  %v1385_v25 = vld [vmem:[%s1914_s6] sm:$0xff]  ;;  %s1494_s6 = smov 96  }
 0xddc   :  { %1010 = vmatpush.bf16.msrb.mxu0 %v1385_v25  ;;  %1062 = vmatpush.bf16.msrb.mxu1 %v1385_v25 }
 0xddd   :  { %v863_v27 = vpack.c.bf16 %v862_v26, %v862_v26  ;;  %1114 = vmatpush.bf16.msra.mxu2 %v1385_v25 }
 0xddf   :  { %865 = vrot.lane.b32.xlu2 %v863_v27, %s1493_s16 }
 0xe39   :  { %v866_v28 = vpop.permute.xlu2 %865 }
 0xe3a   :  { %1339 = vmatmul.msk.bf16.vlgmr.msrb.gmra.mxu2 %vm512_vm10, %v866_v28 }
 0xebd   :  { %v879_v31 = vpop.f32.mrf.mxu2 }
 0xebe   :  { %v883_v32 = vadd.f32 %v879_v31, %v448_v30  ;;  %v1828_v30 = vld [vmem:[%s1915_s7] ss:$0 sm:$0xff] }
 0xec0   :  { %v1340_v33 = vmul.f32 -1.442695, %v883_v32 }
 0xec2   :  { %1451 = vpow2.f32 %v1340_v33 }
 0xec5   :  { %v881_v34 = vpop.f32.mrf.mxu2 }
 0xec8   :  { %v1452_v35 = vpop.eup %1451 }
 0xec9   :  { %v888_v37 = vadd.f32 1.0, %v1452_v35 }
 0xecb   :  { %1453 = vrcp.f32 %v888_v37  ;;  %v900_v42 = vand.u32 2147483648, %v888_v37  ;;  %v898_v44 = vand.u32 2147483647, %v888_v37  ;;  %vm894_vm7 = vweird.f32 %v888_v37 }
 0xecc   :  { %1455 = vtanh.f32 %v883_v32 }
 0xecd   :  { %v901_v36 = vor.u32 1.1754944e-38, %v900_v42  ;;  %vm899_vm9 = vcmp.eq.f32.partialorder %v898_v44, 8.507059e+37 }
 0xed1   :  { %v1454_v38 = vpop.eup %1453 }
 0xed2   :  { %v890_v40 = vmul.f32 %v1454_v38, %v888_v37  ;;  %vm895_vm5 = vweird.f32 %v1454_v38  ;;  %v1456_v46 = vpop.eup %1455 }
 0xed3   :  { %vm896_vm8 = vmor %vm894_vm7, %vm895_vm5 }
 0xed4   :  { %v891_v41 = vsub.f32 1.0, %v890_v40 }
 0xed6   :  { %v892_v43 = vmul.f32 %v1454_v38, %v891_v41 }
 0xed8   :  { %v893_v45 = vadd.f32 %v1454_v38, %v892_v43 }
 0xeda   :  { %v897_v24 = vsel %vm896_vm8, %v1454_v38, %v893_v45 }
 0xedb   :  { %v902_v47 = vsel %vm899_vm9, %v901_v36, %v897_v24 }
 0xedc   :  { %v904_v48 = vsel %vm1682_vm6, %v1456_v46, %v902_v47 }
 0xedd   :  { %907 = vrot.lane.b32.xlu0 %v904_v48, %s1492_s4  ;;  %v905_v52 = vmul.f32 %v904_v48, %v856_v21 }
 0xf4f   :  { %v908_v49 = vpop.permute.xlu0 %907 }
 0xf50   :  { %v910_v50 = vmul.f32 %v908_v49, %v904_v48 }
 0xf52   :  { %912 = vrot.lane.b32.xlu1 %v910_v50, %s1493_s16 }
 0xfc4   :  { %v913_v53 = vpop.permute.xlu1 %912 }
 0xfc5   :  { %v915_v55 = vadd.f32 %v913_v53, %v905_v52 }
 0xfc7   :  { %1457 = vtanh.f32 %v915_v55 }
 0xfcd   :  { %v1458_v58 = vpop.eup %1457 }
 0xfce   :  { %918 = vrot.lane.b32.xlu2 %v1458_v58, %s1492_s4 }
0x1028   :  { %v919_v59 = vpop.permute.xlu2 %918 }
0x1029   :  { %v921_v54 = vmul.f32 %v919_v59, %v904_v48 }
0x102b   :  { %v922_v60 = vpack.c.bf16 %v921_v54, %v921_v54 }
0x102d   :  { %924 = vrot.lane.b32.xlu0 %v922_v60, %s1493_s16 }
0x109f   :  { %v925_v61 = vpop.permute.xlu0 %924 }
0x10a0   :  { %1341 = vmatmul.msk.bf16.vlgmr.msrb.gmra.mxu3 %vm512_vm10, %v925_v61 }
0x1123   :  { %v938_v3 = vpop.f32.mrf.mxu3 }
0x1124   :  { %v942_v4 = vadd.f32 %v938_v3, %v499_v63 }
0x1126   :  { %v1342_v5 = vmul.f32 -1.442695, %v942_v4 }
0x1128   :  { %1459 = vpow2.f32 %v1342_v5 }
0x112b   :  { %v940_v8 = vpop.f32.mrf.mxu3 }
0x112e   :  { %v1460_v9 = vpop.eup %1459 }
0x112f   :  { %v947_v10 = vadd.f32 1.0, %v1460_v9 }
0x1131   :  { %1461 = vrcp.f32 %v947_v10  ;;  %v959_v6 = vand.u32 2147483648, %v947_v10  ;;  %v957_v19 = vand.u32 2147483647, %v947_v10  ;;  %vm953_vm12 = vweird.f32 %v947_v10 }
0x1132   :  { %1463 = vtanh.f32 %v942_v4 }
0x1133   :  { %v960_v39 = vor.u32 1.1754944e-38, %v959_v6  ;;  %vm958_vm14 = vcmp.eq.f32.partialorder %v957_v19, 8.507059e+37 }
0x1137   :  { %v1462_v11 = vpop.eup %1461 }
0x1138   :  { %v949_v12 = vmul.f32 %v1462_v11, %v947_v10  ;;  %vm954_vm11 = vweird.f32 %v1462_v11  ;;  %v1464_v56 = vpop.eup %1463 }
0x1139   :  { %vm955_vm13 = vmor %vm953_vm12, %vm954_vm11 }
0x113a   :  { %v950_v14 = vsub.f32 1.0, %v949_v12 }
0x113c   :  { %v951_v1 = vmul.f32 %v1462_v11, %v950_v14 }
0x113e   :  { %v952_v2 = vadd.f32 %v1462_v11, %v951_v1 }
0x1140   :  { %v956_v22 = vsel %vm955_vm13, %v1462_v11, %v952_v2 }
0x1141   :  { %v961_v7 = vsel %vm958_vm14, %v960_v39, %v956_v22 }
0x1142   :  { %v963_v13 = vsel %vm1682_vm6, %v1464_v56, %v961_v7 }
0x1143   :  { %966 = vrot.lane.b32.xlu1 %v963_v13, %s1492_s4  ;;  %v964_v18 = vmul.f32 %v963_v13, %v915_v55 }
0x11b5   :  { %v967_v15 = vpop.permute.xlu1 %966 }
0x11b6   :  { %v969_v17 = vmul.f32 %v967_v15, %v963_v13 }
0x11b8   :  { %971 = vrot.lane.b32.xlu2 %v969_v17, %s1493_s16 }
0x1212   :  { %v972_v20 = vpop.permute.xlu2 %971 }
0x1213   :  { %v974_v16 = vadd.f32 %v972_v20, %v964_v18 }
0x1215   :  { %1465 = vtanh.f32 %v974_v16 }
0x121b   :  { %v1466_v21 = vpop.eup %1465 }
0x121c   :  { %977 = vrot.lane.b32.xlu0 %v1466_v21, %s1492_s4 }
0x128e   :  { %v978_v26 = vpop.permute.xlu0 %977 }
0x128f   :  { %v980_v27 = vmul.f32 %v978_v26, %v963_v13 }
0x1291   :  { %v981_v28 = vpack.c.bf16 %v980_v27, %v980_v27 }
0x1293   :  { %986 = vrot.lane.b32.xlu1 %v981_v28, %s1493_s16 }
0x1305   :  { %v987_v29 = vpop.permute.xlu1 %986 }
0x1306   :  { %1351 = vmatmul.msk.bf16.vlgmr.msrb.gmra.mxu0 %vm512_vm10, %v987_v29 }
0x1383   :  { %v1012_v31 = vpop.f32.mrf.mxu0 }
0x1384   :  { %v1013_v32 = vadd.f32 %v1828_v30, %v1012_v31 }
0x1386   :  { %v1352_v33 = vmul.f32 -1.442695, %v1013_v32 }
0x1388   :  { %1467 = vpow2.f32 %v1352_v33 }
0x138b   :  { %v1014_v34 = vpop.f32.mrf.mxu0 }
0x138e   :  { %v1468_v35 = vpop.eup %1467 }
0x138f   :  { %v1020_v37 = vadd.f32 1.0, %v1468_v35 }
0x1391   :  { %1469 = vrcp.f32 %v1020_v37  ;;  %v1032_v42 = vand.u32 2147483648, %v1020_v37  ;;  %v1030_v44 = vand.u32 2147483647, %v1020_v37  ;;  %vm1026_vm1 = vweird.f32 %v1020_v37 }
0x1392   :  { %1471 = vtanh.f32 %v1013_v32 }
0x1393   :  { %v1033_v36 = vor.u32 1.1754944e-38, %v1032_v42  ;;  %vm1031_vm4 = vcmp.eq.f32.partialorder %v1030_v44, 8.507059e+37  ;;  %v1387_v44 = vld [vmem:[%s1916_s8] sm:$0xff] }
0x1397   :  { %v1470_v38 = vpop.eup %1469 }
0x1398   :  { %v1022_v40 = vmul.f32 %v1470_v38, %v1020_v37  ;;  %vm1027_vm15 = vweird.f32 %v1470_v38  ;;  %v1472_v46 = vpop.eup %1471 }
0x1399   :  { %vm1028_vm3 = vmor %vm1026_vm1, %vm1027_vm15  ;;  %vm1251_vm15 = vcmask 57344  }
0x139a   :  { %v1023_v41 = vsub.f32 1.0, %v1022_v40 }
0x139c   :  { %v1024_v43 = vmul.f32 %v1470_v38, %v1023_v41 }
0x139e   :  { %v1025_v45 = vadd.f32 %v1470_v38, %v1024_v43  ;;  %v1388_v43 = vld [vmem:[%s1916_s8 + $0x8] sm:$0xff] }
0x139f   :  { %1189 = vmatpush.bf16.msra.mxu3 %v1388_v43 }
0x13a0   :  { %v1029_v24 = vsel %vm1028_vm3, %v1470_v38, %v1025_v45 }
0x13a1   :  { %v1034_v47 = vsel %vm1031_vm4, %v1033_v36, %v1029_v24 }
0x13a2   :  { %v1036_v48 = vsel %vm1682_vm6, %v1472_v46, %v1034_v47 }
0x13a3   :  { %1038 = vrot.lane.b32.xlu2 %v1036_v48, %s1492_s4  ;;  %1190 = vmatpush.bf16.msra.mxu3 %v1387_v44 }
0x13fd   :  { %v1039_v49 = vpop.permute.xlu2 %1038 }
0x13fe   :  { %v1041_v50 = vmul.f32 %v1039_v49, %v1036_v48  ;;  %v1392_v49 = vld [vmem:[%s1918_s10 + $0x18] sm:$0xff] }
0x13ff   :  { %1233 = vmatpush.bf16.msra.mxu0 %v1392_v49 }
0x1400   :  { %1473 = vtanh.f32 %v1041_v50  ;;  %v1391_v50 = vld [vmem:[%s1918_s10 + $0x10] sm:$0xff] }
0x1403   :  { %1234 = vmatpush.bf16.msra.mxu0 %v1391_v50 }
0x1406   :  { %v1474_v52 = vpop.eup %1473 }
0x1407   :  { %1044 = vrot.lane.b32.xlu0 %v1474_v52, %s1494_s6  ;;  %v1390_v52 = vld [vmem:[%s1918_s10 + $0x8] sm:$0xff] }
0x1408   :  { %1235 = vmatpush.bf16.msra.mxu0 %v1390_v52 }
0x1479   :  { %v1045_v53 = vpop.permute.xlu0 %1044 }
0x147a   :  { %v1835_v55 = vmul.f32 %v1045_v53, %v1036_v48 }
0x147c   :  { %v1048_v58 = vpack.c.bf16 %v1835_v55, %v1835_v55 }
0x147e   :  { %1050 = vrot.lane.b32.xlu1 %v1048_v58, %s1493_s16  ;;  %v1401_v58 = vld [vmem:[%s1917_s9] ss:$0 sm:$0xff] }
0x14f0   :  { %v1051_v59 = vpop.permute.xlu1 %1050 }
0x14f1   :  { %1353 = vmatmul.msk.bf16.vlgmr.msrb.gmra.mxu1 %vm512_vm10, %v1051_v59 }
0x156e   :  { %v1064_v54 = vpop.f32.mrf.mxu1 }
0x156f   :  { %v1065_v60 = vadd.f32 %v1828_v30, %v1064_v54 }
0x1571   :  { %v1354_v61 = vmul.f32 -1.442695, %v1065_v60 }
0x1573   :  { %1475 = vpow2.f32 %v1354_v61 }
0x1576   :  { %v1066_v62 = vpop.f32.mrf.mxu1 }
0x1579   :  { %v1476_v63 = vpop.eup %1475 }
0x157a   :  { %v1072_v3 = vadd.f32 1.0, %v1476_v63 }
0x157c   :  { %1477 = vrcp.f32 %v1072_v3  ;;  %v1084_v9 = vand.u32 2147483648, %v1072_v3  ;;  %v1082_v11 = vand.u32 2147483647, %v1072_v3  ;;  %vm1078_vm7 = vweird.f32 %v1072_v3 }
0x157d   :  { %1479 = vtanh.f32 %v1065_v60 }
0x157e   :  { %v1085_v14 = vor.u32 1.1754944e-38, %v1084_v9  ;;  %vm1083_vm9 = vcmp.eq.f32.partialorder %v1082_v11, 8.507059e+37 }
0x1582   :  { %v1478_v4 = vpop.eup %1477 }
0x1583   :  { %v1074_v5 = vmul.f32 %v1478_v4, %v1072_v3  ;;  %vm1079_vm5 = vweird.f32 %v1478_v4  ;;  %v1480_v1 = vpop.eup %1479 }
0x1584   :  { %vm1080_vm8 = vmor %vm1078_vm7, %vm1079_vm5 }
0x1585   :  { %v1075_v8 = vsub.f32 1.0, %v1074_v5 }
0x1587   :  { %v1076_v10 = vmul.f32 %v1478_v4, %v1075_v8  ;;  %v1496_v8 = vmov 0.0  }
0x1589   :  { %v1077_v12 = vadd.f32 %v1478_v4, %v1076_v10 }
0x158b   :  { %v1081_v6 = vsel %vm1080_vm8, %v1478_v4, %v1077_v12 }
0x158c   :  { %v1086_v19 = vsel %vm1083_vm9, %v1085_v14, %v1081_v6 }
0x158d   :  { %v1088_v2 = vsel %vm1682_vm6, %v1480_v1, %v1086_v19 }
0x158e   :  { %1090 = vrot.lane.b32.xlu2 %v1088_v2, %s1492_s4 }
0x15e8   :  { %v1091_v39 = vpop.permute.xlu2 %1090 }
0x15e9   :  { %v1093_v22 = vmul.f32 %v1091_v39, %v1088_v2 }
0x15eb   :  { %1481 = vtanh.f32 %v1093_v22 }
0x15f1   :  { %v1482_v56 = vpop.eup %1481 }
0x15f2   :  { %1096 = vrot.lane.b32.xlu0 %v1482_v56, %s1494_s6 }
0x1664   :  { %v1097_v7 = vpop.permute.xlu0 %1096 }
0x1665   :  { %v1099_v13 = vmul.f32 %v1097_v7, %v1088_v2 }
0x1667   :  { %v1100_v15 = vpack.c.bf16 %v1099_v13, %v1099_v13  ;;  %v1153_v57 = vrot.slane %v1099_v13, 6 }
0x1669   :  { %1102 = vrot.lane.b32.xlu1 %v1100_v15, %s1493_s16 }
0x16db   :  { %v1103_v17 = vpop.permute.xlu1 %1102 }
0x16dc   :  { %1355 = vmatmul.msk.bf16.vlgmr.msra.gmra.mxu2 %vm512_vm10, %v1103_v17 }
0x175f   :  { %v1116_v18 = vpop.f32.mrf.mxu2 }
0x1760   :  { %v1117_v20 = vadd.f32 %v1828_v30, %v1116_v18 }
0x1762   :  { %v1356_v16 = vmul.f32 -1.442695, %v1117_v20 }
0x1764   :  { %1483 = vpow2.f32 %v1356_v16 }
0x1767   :  { %v1118_v21 = vpop.f32.mrf.mxu2 }
0x176a   :  { %v1484_v23 = vpop.eup %1483 }
0x176b   :  { %v1124_v25 = vadd.f32 1.0, %v1484_v23 }
0x176d   :  { %1485 = vrcp.f32 %v1124_v25  ;;  %v1136_v29 = vand.u32 2147483648, %v1124_v25  ;;  %v1134_v32 = vand.u32 2147483647, %v1124_v25  ;;  %vm1130_vm12 = vweird.f32 %v1124_v25 }
0x176e   :  { %1487 = vtanh.f32 %v1117_v20 }
0x176f   :  { %v1137_v34 = vor.u32 1.1754944e-38, %v1136_v29  ;;  %vm1135_vm14 = vcmp.eq.f32.partialorder %v1134_v32, 8.507059e+37 }
0x1773   :  { %v1486_v26 = vpop.eup %1485 }
0x1774   :  { %v1126_v27 = vmul.f32 %v1486_v26, %v1124_v25  ;;  %vm1131_vm11 = vweird.f32 %v1486_v26  ;;  %v1488_v30 = vpop.eup %1487 }
0x1775   :  { %vm1132_vm13 = vmor %vm1130_vm12, %vm1131_vm11 }
0x1776   :  { %v1127_v28 = vsub.f32 1.0, %v1126_v27 }
0x1778   :  { %v1128_v31 = vmul.f32 %v1486_v26, %v1127_v28 }
0x177a   :  { %v1129_v33 = vadd.f32 %v1486_v26, %v1128_v31 }
0x177c   :  { %v1133_v35 = vsel %vm1132_vm13, %v1486_v26, %v1129_v33 }
0x177d   :  { %v1138_v37 = vsel %vm1135_vm14, %v1137_v34, %v1133_v35 }
0x177e   :  { %v1140_v38 = vsel %vm1682_vm6, %v1488_v30, %v1138_v37  ;;  %vm1158_vm6 = vcmask 1041408  }
0x177f   :  { %1142 = vrot.lane.b32.xlu2 %v1140_v38, %s1492_s4  ;;  %v1159_v46 = vsel %vm1158_vm6, %v1835_v55, %v1153_v57  ;;  %v1389_v55 = vld [vmem:[%s1918_s10] sm:$0xff] }
0x1780   :  { %1236 = vmatpush.bf16.msra.mxu0 %v1389_v55 }
0x1787   :  { %1242 = vrot.lane.b32.xlu2 %v1743_v0, %s1495_s2  ;;  %v1402_v0 = vld [vmem:[%s1919_s11] ss:$0 sm:$0xff] }
0x17d9   :  { %v1143_v40 = vpop.permute.xlu2 %1142 }
0x17da   :  { %v1145_v41 = vmul.f32 %v1143_v40, %v1140_v38 }
0x17dc   :  { %1489 = vtanh.f32 %v1145_v41 }
0x17e1   :  { %v1243_v63 = vpop.permute.xlu2 %1242 }
0x17e2   :  { %v1490_v42 = vpop.eup %1489  ;;  %v1245_v4 = vsel %vm85_vm2, 0.0, %v1243_v63 }
0x17e3   :  { %1148 = vrot.lane.b32.xlu0 %v1490_v42, %s1494_s6 }
0x1855   :  { %v1149_v45 = vpop.permute.xlu0 %1148 }
0x1856   :  { %v1151_v36 = vmul.f32 %v1149_v45, %v1140_v38 }
0x1858   :  { %v1156_v24 = vrot.slane %v1151_v36, 4 }
0x185a   :  { %v1160_v47 = vsel %vm88_vm0, %v1159_v46, %v1156_v24  ;;  %vm1225_vm0 = vcmask 523264  }
0x185b   :  { %v1161_v48 = vpack.c.bf16 %v1160_v47, %v1160_v47 }
0x185d   :  { %1166 = vrot.lane.b32.xlu1 %v1161_v48, %s1493_s16 }
0x18cf   :  { %v1167_v53 = vpop.permute.xlu1 %1166 }
0x18d0   :  { %1365 = vmatmul.msk.bf16.vlgmr.msra.gmra.mxu3 %vm512_vm10, %v1167_v53  ;;  %vm77_vm10 = vcmp.ge.s32.totalorder %v1678_v51, 4 }
0x18d1   :  { %v1287_v9 = vsel %vm77_vm10, 1.0, %v1496_v8 }
0x1953   :  { %v1192_v59 = vpop.f32.mrf.mxu3 }
0x1954   :  { %v1193_v54 = vadd.f32 %v1401_v58, %v1192_v59 }
0x1956   :  { %v1196_v60 = vmax.f32 %v1193_v54, 0.0 }
0x1958   :  { %v1197_v61 = vpack.c.bf16 %v1196_v60, %v1196_v60 }
0x195a   :  { %1382 = vmatmul.msk.bf16.vlgmr.msra.gmra.mxu0 %vm1225_vm0, %v1197_v61 }
0x195b   :  { %v1194_v62 = vpop.f32.mrf.mxu3 }
0x19d7   :  { %v1238_v3 = vpop.f32.mrf.mxu0 }
0x19d8   :  { %v1239_v5 = vadd.f32 %v1402_v0, %v1238_v3 }
0x19da   :  { %v1246_v10 = vadd.f32 %v1245_v4, %v1239_v5 }
0x19dc   :  { %v1247_v11 = vmul.f32 %v1287_v9, %v1246_v10  ;;  %v1249_v12 = vrot.slane %v1246_v10, 1  ;;  %1252 = vst.msk [vmem:[%s1920_s12] sm:$0x1] %vm1251_vm15, %v1246_v10 }
0x19de   :  { %1253 = vst.msk [vmem:[%s1920_s12 + $0x4] sm:$0x1] %vm1251_vm15, %v1249_v12  ;;  %v1255_v51 = vrot.slane %v1247_v11, 6 }
0x19df   :  { %v1240_v14 = vpop.f32.mrf.mxu0 }
0x19e0   :  { %v1257_v6 = vadd.f32 %v1255_v51, %v1239_v5 }
0x19e2   :  { %v1258_v1 = vmul.f32 %v1287_v9, %v1257_v6  ;;  %1260 = vst [vmem:[#allocation1] sm:$0xff] %v1257_v6 }
0x19e4   :  { %v1270_v19 = vrot.slane %v1258_v1, 6 }
0x19e6   :  { %v1272_v22 = vadd.f32 %v1270_v19, %v1239_v5 }
0x19e9   :  { %v1262_v2 = vld [vmem:[#allocation1 + $0x2] ss:$9 sm:$0xff] }
0x19ea   :  { %v1264_v39 = vld [vmem:[#allocation1 + $0x3] ss:$9 sm:$0xff]  ;;  %1267 = vst.msk [vmem:[%s1920_s12 + $0x1] sm:$0x1] %vm1251_vm15, %v1262_v2 }
0x19eb   :  { %1268 = vst.msk [vmem:[%s1920_s12 + $0x5] sm:$0x1] %vm1251_vm15, %v1264_v39 }
0x19ec   :  { %1274 = vst [vmem:[#allocation1] sm:$0xff] %v1272_v22 }
0x19f3   :  { %v1276_v56 = vld [vmem:[#allocation1 + $0x4] ss:$9 sm:$0xff] }
0x19f4   :  { %v1278_v7 = vld [vmem:[#allocation1 + $0x5] ss:$9 sm:$0xff]  ;;  %1281 = vst.msk [vmem:[%s1920_s12 + $0x2] sm:$0x1] %vm1251_vm15, %v1276_v56 }
0x19f5   :  { %1282 = vst.msk [vmem:[%s1920_s12 + $0x6] sm:$0x1] %vm1251_vm15, %v1278_v7 }

</bundles_post_ra>
